<compile_context>
chip_gen: v7x
topology: tpu7x:2x2x1
jax: 0.10.0
libtpu: 0.0.40
codegen_flags: <defaults>
</compile_context>

<pallas_src>
import math

import jax
import jax.numpy as jnp
from jax.experimental import pallas as pl
from jax.experimental.pallas import tpu as pltpu

# ----------------------------- small BERT config -----------------------------
VOCAB = 100
TYPE_VOCAB = 2
MAX_POS = 32
HIDDEN = 32
N_HEADS = 2
HEAD_DIM = HIDDEN // N_HEADS
INTERMEDIATE = 64
N_LAYERS = 2
N_LABELS = 3
LN_EPS = 1e-12
VEC_W = 128       # lane width of the packed bias / LayerNorm vector slab
LOGIT_PAD = 128   # lane-dense logits output width (sliced to N_LABELS outside)


# ------------------------------ in-kernel helpers -----------------------------
def _layernorm(x, g, b):
    mu = jnp.mean(x, axis=-1, keepdims=True)
    var = jnp.mean(jnp.square(x - mu), axis=-1, keepdims=True)
    inv = jax.lax.rsqrt(var + LN_EPS)
    return (x - mu) * inv * g + b


def _mm(x_f32, w_bf16):
    # bf16 MXU inputs, f32 accumulation.
    return jnp.dot(x_f32.astype(jnp.bfloat16), w_bf16,
                   preferred_element_type=jnp.float32)


def _gelu(x):
    # TODO(synk): HF BERT uses exact erf-GELU; tanh approximation used here.
    c = math.sqrt(2.0 / math.pi)
    return 0.5 * x * (1.0 + jnp.tanh(c * (x + 0.044715 * x * x * x)))


# --------------------------- fused whole-model kernel --------------------------
def _make_kernel(B, S):
    BS = B * S

    def vec(vec_ref, row, width):
        # static row / width -> zero-cost (1, width) slice of the f32 slab
        return vec_ref[row:row + 1, :width]

    def kernel(emb_ref, bias_ref, wa_ref, wf2_ref, whead_ref, vec_ref, out_ref):
        x = emb_ref[...]          # (BS, H) f32 -- whole batch folded on rows
        bias = bias_ref[...]      # (NH*BS, NH*BS) f32 additive mask

        x = _layernorm(x, vec(vec_ref, 0, HIDDEN), vec(vec_ref, 1, HIDDEN))

        for l in range(N_LAYERS):
            base = 2 + l * 8
            wa = wa_ref[l]                                   # (H, 3H+H+I) bf16
            qkv_w = wa[:, :3 * HIDDEN]
            ao_w = wa[:, 3 * HIDDEN:4 * HIDDEN]
            ff1_w = wa[:, 4 * HIDDEN:4 * HIDDEN + INTERMEDIATE]
            ff2_w = wf2_ref[l]                               # (I, H) bf16

            # fused QKV projection (1/sqrt(dh) already folded into Q weights)
            qkv = _mm(x, qkv_w) + vec(vec_ref, base + 0, 3 * HIDDEN)  # (BS, 3H)

            # fold heads onto the row axis: (N_HEADS*BS, HEAD_DIM)
            def fold(off):
                return jnp.concatenate(
                    [qkv[:, off + h * HEAD_DIM: off + (h + 1) * HEAD_DIM]
                     for h in range(N_HEADS)], axis=0)
            qf = fold(0)
            kf = fold(HIDDEN)
            vf = fold(2 * HIDDEN)

            # one block-diagonal score matmul covering every (head, example)
            s = jax.lax.dot_general(
                qf.astype(jnp.bfloat16), kf.astype(jnp.bfloat16),
                dimension_numbers=(((1,), (1,)), ((), ())),
                preferred_element_type=jnp.float32)          # (NH*BS, NH*BS)
            s = s + bias
            s = s - jnp.max(s, axis=-1, keepdims=True)
            e = jnp.exp(s)
            p = e * pl.reciprocal(jnp.sum(e, axis=-1, keepdims=True),
                                  approx=True)
            ctx_f = jnp.dot(p.astype(jnp.bfloat16), vf.astype(jnp.bfloat16),
                            preferred_element_type=jnp.float32)  # (NH*BS, dh)
            # unfold heads back onto the feature axis -> (BS, H)
            ctx = jnp.concatenate([ctx_f[h * BS:(h + 1) * BS, :]
                                   for h in range(N_HEADS)], axis=1)
            attn_out = _mm(ctx, ao_w) + vec(vec_ref, base + 1, HIDDEN)
            x = _layernorm(attn_out + x, vec(vec_ref, base + 2, HIDDEN),
                           vec(vec_ref, base + 3, HIDDEN))

            # ---- feed forward ----
            h1 = _gelu(_mm(x, ff1_w) + vec(vec_ref, base + 4, INTERMEDIATE))
            h2 = _mm(h1, ff2_w) + vec(vec_ref, base + 5, HIDDEN)
            x = _layernorm(h2 + x, vec(vec_ref, base + 6, HIDDEN),
                           vec(vec_ref, base + 7, HIDDEN))

        # ---- pooler (CLS token per example, tanh) + classifier, fused ----
        pool_row = 2 + 8 * N_LAYERS
        cls_rows = jnp.concatenate([x[b * S:b * S + 1, :] for b in range(B)],
                                   axis=0)                   # (B, H)
        wh = whead_ref[...]                                  # (H, H+128) bf16
        pool_w = wh[:, :HIDDEN]
        cls_w = wh[:, HIDDEN:HIDDEN + LOGIT_PAD]             # zero-padded cols
        pooled = jnp.tanh(_mm(cls_rows, pool_w) + vec(vec_ref, pool_row, HIDDEN))
        out_ref[...] = _mm(pooled, cls_w) + vec(vec_ref, pool_row + 1, LOGIT_PAD)

    return kernel


# ------------------------------ parameter init --------------------------------
def init_params(key):
    keys = iter(jax.random.split(key, 16))

    def nrm(shape):
        return 0.02 * jax.random.normal(next(keys), shape, dtype=jnp.float32)

    L = N_LAYERS
    return {
        # embedding tables (gathered in plain JAX)
        "word_emb": nrm((VOCAB, HIDDEN)),
        "pos_emb": nrm((MAX_POS, HIDDEN)),
        "type_emb": nrm((TYPE_VOCAB, HIDDEN)),
        "emb_ln_g": jnp.ones((1, HIDDEN), jnp.float32),
        "emb_ln_b": jnp.zeros((1, HIDDEN), jnp.float32),
        # encoder layers, stacked along a leading layer axis
        "qkv_w": nrm((L, HIDDEN, 3 * HIDDEN)),
        "qkv_b": jnp.zeros((L, 1, 3 * HIDDEN), jnp.float32),
        "ao_w": nrm((L, HIDDEN, HIDDEN)),
        "ao_b": jnp.zeros((L, 1, HIDDEN), jnp.float32),
        "attn_ln_g": jnp.ones((L, 1, HIDDEN), jnp.float32),
        "attn_ln_b": jnp.zeros((L, 1, HIDDEN), jnp.float32),
        "ff1_w": nrm((L, HIDDEN, INTERMEDIATE)),
        "ff1_b": jnp.zeros((L, 1, INTERMEDIATE), jnp.float32),
        "ff2_w": nrm((L, INTERMEDIATE, HIDDEN)),
        "ff2_b": jnp.zeros((L, 1, HIDDEN), jnp.float32),
        "out_ln_g": jnp.ones((L, 1, HIDDEN), jnp.float32),
        "out_ln_b": jnp.zeros((L, 1, HIDDEN), jnp.float32),
        # pooler + classifier head
        "pool_w": nrm((HIDDEN, HIDDEN)),
        "pool_b": jnp.zeros((1, HIDDEN), jnp.float32),
        "cls_w": nrm((HIDDEN, N_LABELS)),
        "cls_b": jnp.zeros((1, N_LABELS), jnp.float32),
    }


def pack_params(params):
    """One-time parameter prep (outside jit): fold the attention scale into the
    Q projection, cast matmul weights to bf16 and pack everything into 4 slabs."""
    scale = 1.0 / math.sqrt(HEAD_DIM)
    qkv_w = params["qkv_w"].at[:, :, :HIDDEN].multiply(scale)
    qkv_b = params["qkv_b"].at[:, :, :HIDDEN].multiply(scale)

    # per-layer bf16 weight slab A: [ qkv_w | ao_w | ff1_w ]  -> (L, H, 3H+H+I)
    wa = jnp.concatenate([qkv_w, params["ao_w"], params["ff1_w"]],
                         axis=2).astype(jnp.bfloat16)
    # per-layer bf16 weight slab B: ff2_w -> (L, I, H)
    wf2 = params["ff2_w"].astype(jnp.bfloat16)
    # head slab: [ pool_w | cls_w zero-padded to 128 lanes ] -> (H, H+128)
    cls_w_pad = jnp.zeros((HIDDEN, LOGIT_PAD), jnp.float32).at[
        :, :N_LABELS].set(params["cls_w"])
    whead = jnp.concatenate([params["pool_w"], cls_w_pad],
                            axis=1).astype(jnp.bfloat16)

    # f32 vector slab: one 128-lane row per bias / gamma / beta
    def pad_row(a):
        a = jnp.asarray(a, jnp.float32).reshape(1, -1)
        return jnp.zeros((1, VEC_W), jnp.float32).at[:, :a.shape[1]].set(a)

    rows = [pad_row(params["emb_ln_g"]), pad_row(params["emb_ln_b"])]
    for l in range(N_LAYERS):
        rows += [pad_row(qkv_b[l]), pad_row(params["ao_b"][l]),
                 pad_row(params["attn_ln_g"][l]), pad_row(params["attn_ln_b"][l]),
                 pad_row(params["ff1_b"][l]), pad_row(params["ff2_b"][l]),
                 pad_row(params["out_ln_g"][l]), pad_row(params["out_ln_b"][l])]
    rows += [pad_row(params["pool_b"]), pad_row(params["cls_b"])]
    vecs = jnp.concatenate(rows, axis=0)           # (2 + 8L + 2, 128)

    return {"word_emb": params["word_emb"], "pos_emb": params["pos_emb"],
            "type_emb": params["type_emb"],
            "wa": wa, "wf2": wf2, "whead": whead, "vecs": vecs}


# --------------------------------- forward -----------------------------------
def emotion_finbert_forward(packed, tokens, mask, ids):
    """Mirrors Emotion_FinBERT.forward -> returns logits of shape (B, 3)."""
    B, S = tokens.shape
    BS = B * S

    # --- embeddings (gather = plain-JAX glue), batch folded onto rows ---
    pos_ids = jnp.arange(S, dtype=jnp.int32)
    emb = (jnp.take(packed["word_emb"], tokens, axis=0)
           + jnp.take(packed["pos_emb"], pos_ids, axis=0)[None, :, :]
           + jnp.take(packed["type_emb"], ids, axis=0)).astype(jnp.float32)
    emb = emb.reshape(BS, HIDDEN)

    # --- block-diagonal additive attention bias over (head, example) ---
    # row/col index r = h*BS + b*S + s ; allowed iff same head & same example;
    # padded keys inside an allowed block get the HF-style -10000 bias.
    h_idx = jnp.repeat(jnp.arange(N_HEADS, dtype=jnp.int32), BS)
    b_idx = jnp.tile(jnp.repeat(jnp.arange(B, dtype=jnp.int32), S), N_HEADS)
    key_valid = jnp.tile(mask.reshape(-1).astype(jnp.float32), N_HEADS)
    allow = ((h_idx[:, None] == h_idx[None, :])
             & (b_idx[:, None] == b_idx[None, :]))
    pad_bias = (1.0 - key_valid)[None, :] * (-10000.0)
    attn_bias = jnp.where(allow, pad_bias, -1e9).astype(jnp.float32)
    # TODO(synk): dropout omitted (eval / inference semantics).

    vmem = pl.BlockSpec(memory_space=pltpu.MemorySpace.VMEM)
    out = pl.pallas_call(
        _make_kernel(B, S),
        out_shape=jax.ShapeDtypeStruct((B, LOGIT_PAD), jnp.float32),
        in_specs=[vmem] * 6,
        out_specs=vmem,
    )(emb, attn_bias, packed["wa"], packed["wf2"], packed["whead"],
      packed["vecs"])
    return out[:, :N_LABELS]


# ----------------------------------- main -------------------------------------
if __name__ == "__main__":
    B, S = 2, 8
    key = jax.random.PRNGKey(0)
    k_p, k_tok, k_ids = jax.random.split(key, 3)

    params = init_params(k_p)
    packed = pack_params(params)        # one-time weight prep, outside jit
    tokens = jax.random.randint(k_tok, (B, S), 0, VOCAB, dtype=jnp.int32)
    ids = jax.random.randint(k_ids, (B, S), 0, TYPE_VOCAB, dtype=jnp.int32)
    # attention mask: last two positions of the second example are padding
    mask = jnp.ones((B, S), jnp.int32).at[1, -2:].set(0)

    fwd = jax.jit(emotion_finbert_forward)
    logits = jax.block_until_ready(fwd(packed, tokens, mask, ids))
    assert logits.shape == (B, N_LABELS)
    assert bool(jnp.all(jnp.isfinite(logits)))
    print("KERNEL_OK")
</pallas_src>

<mosaic_0001>
module attributes {stable_mosaic.version = 11 : i64} {
  func.func @kernel(%arg0: memref<16x32xf32, #tpu.memory_space<vmem>>, %arg1: memref<32x32xf32, #tpu.memory_space<vmem>>, %arg2: memref<2x32x192xbf16, #tpu.memory_space<vmem>>, %arg3: memref<2x64x32xbf16, #tpu.memory_space<vmem>>, %arg4: memref<32x160xbf16, #tpu.memory_space<vmem>>, %arg5: memref<20x128xf32, #tpu.memory_space<vmem>>, %arg6: memref<2x128xf32, #tpu.memory_space<vmem>>) attributes {dimension_semantics = [], scalar_prefetch = 0 : i64, scratch_operands = 0 : i64, tpu.core_type = #tpu.core_type<tc>} {
    %c0 = arith.constant 0 : index
    %c0_0 = arith.constant 0 : index
    %0 = vector.load %arg0[%c0, %c0_0] : memref<16x32xf32, #tpu.memory_space<vmem>>, vector<16x32xf32>
    %c0_1 = arith.constant 0 : index
    %c0_2 = arith.constant 0 : index
    %1 = vector.load %arg1[%c0_1, %c0_2] : memref<32x32xf32, #tpu.memory_space<vmem>>, vector<32x32xf32>
    %c0_3 = arith.constant 0 : index
    %c0_4 = arith.constant 0 : index
    %2 = vector.load %arg5[%c0_3, %c0_4] : memref<20x128xf32, #tpu.memory_space<vmem>>, vector<1x32xf32>
    %c1 = arith.constant 1 : index
    %c0_5 = arith.constant 0 : index
    %3 = vector.load %arg5[%c1, %c0_5] : memref<20x128xf32, #tpu.memory_space<vmem>>, vector<1x32xf32>
    %cst = arith.constant dense<0.000000e+00> : vector<16xf32>
    %4 = vector.multi_reduction <add>, %0, %cst [1] : vector<16x32xf32> to vector<16xf32>
    %5 = vector.shape_cast %4 : vector<16xf32> to vector<16x1xf32>
    %cst_6 = arith.constant 3.200000e+01 : f32
    %6 = vector.broadcast %cst_6 : f32 to vector<16x1xf32>
    %7 = arith.divf %5, %6 : vector<16x1xf32>
    %8 = vector.broadcast %7 : vector<16x1xf32> to vector<16x32xf32>
    %9 = arith.subf %0, %8 : vector<16x32xf32>
    %10 = arith.mulf %9, %9 : vector<16x32xf32>
    %cst_7 = arith.constant dense<0.000000e+00> : vector<16xf32>
    %11 = vector.multi_reduction <add>, %10, %cst_7 [1] : vector<16x32xf32> to vector<16xf32>
    %12 = vector.shape_cast %11 : vector<16xf32> to vector<16x1xf32>
    %cst_8 = arith.constant 3.200000e+01 : f32
    %13 = vector.broadcast %cst_8 : f32 to vector<16x1xf32>
    %14 = arith.divf %12, %13 : vector<16x1xf32>
    %cst_9 = arith.constant 9.99999996E-13 : f32
    %15 = vector.broadcast %cst_9 : f32 to vector<16x1xf32>
    %16 = arith.addf %14, %15 : vector<16x1xf32>
    %17 = math.rsqrt %16 : vector<16x1xf32>
    %18 = vector.broadcast %7 : vector<16x1xf32> to vector<16x32xf32>
    %19 = arith.subf %0, %18 : vector<16x32xf32>
    %20 = vector.broadcast %17 : vector<16x1xf32> to vector<16x32xf32>
    %21 = arith.mulf %19, %20 : vector<16x32xf32>
    %22 = vector.broadcast %2 : vector<1x32xf32> to vector<16x32xf32>
    %23 = arith.mulf %21, %22 : vector<16x32xf32>
    %24 = vector.broadcast %3 : vector<1x32xf32> to vector<16x32xf32>
    %25 = arith.addf %23, %24 : vector<16x32xf32>
    %c0_10 = arith.constant 0 : index
    %c0_11 = arith.constant 0 : index
    %c0_12 = arith.constant 0 : index
    %26 = vector.load %arg2[%c0_10, %c0_11, %c0_12] : memref<2x32x192xbf16, #tpu.memory_space<vmem>>, vector<1x32x192xbf16>
    %27 = vector.shape_cast %26 : vector<1x32x192xbf16> to vector<32x192xbf16>
    %28 = vector.extract_strided_slice %27 {offsets = [0, 0], sizes = [32, 96], strides = [1, 1]} : vector<32x192xbf16> to vector<32x96xbf16>
    %29 = vector.extract_strided_slice %27 {offsets = [0, 96], sizes = [32, 32], strides = [1, 1]} : vector<32x192xbf16> to vector<32x32xbf16>
    %30 = vector.extract_strided_slice %27 {offsets = [0, 128], sizes = [32, 64], strides = [1, 1]} : vector<32x192xbf16> to vector<32x64xbf16>
    %c0_13 = arith.constant 0 : index
    %c0_14 = arith.constant 0 : index
    %c0_15 = arith.constant 0 : index
    %31 = vector.load %arg3[%c0_13, %c0_14, %c0_15] : memref<2x64x32xbf16, #tpu.memory_space<vmem>>, vector<1x64x32xbf16>
    %32 = vector.shape_cast %31 : vector<1x64x32xbf16> to vector<64x32xbf16>
    %33 = arith.truncf %25 : vector<16x32xf32> to vector<16x32xbf16>
    %cst_16 = arith.constant dense<0.000000e+00> : vector<16x96xf32>
    %34 = tpu.matmul %33, %28, %cst_16 {dimension_numbers = #tpu.dot_dimension_numbers<[1], [0], [0], [1], [0, 0, 1, 1], [], []>} : vector<16x32xbf16>, vector<32x96xbf16>, vector<16x96xf32> -> vector<16x96xf32>
    %c2 = arith.constant 2 : index
    %c0_17 = arith.constant 0 : index
    %35 = vector.load %arg5[%c2, %c0_17] : memref<20x128xf32, #tpu.memory_space<vmem>>, vector<1x96xf32>
    %36 = vector.broadcast %35 : vector<1x96xf32> to vector<16x96xf32>
    %37 = arith.addf %34, %36 : vector<16x96xf32>
    %38 = vector.extract_strided_slice %37 {offsets = [0, 0], sizes = [16, 16], strides = [1, 1]} : vector<16x96xf32> to vector<16x16xf32>
    %39 = vector.extract_strided_slice %37 {offsets = [0, 16], sizes = [16, 16], strides = [1, 1]} : vector<16x96xf32> to vector<16x16xf32>
    %40 = tpu.concatenate %38, %39 in 0 : vector<16x16xf32>, vector<16x16xf32> -> vector<32x16xf32>
    %41 = vector.extract_strided_slice %37 {offsets = [0, 32], sizes = [16, 16], strides = [1, 1]} : vector<16x96xf32> to vector<16x16xf32>
    %42 = vector.extract_strided_slice %37 {offsets = [0, 48], sizes = [16, 16], strides = [1, 1]} : vector<16x96xf32> to vector<16x16xf32>
    %43 = tpu.concatenate %41, %42 in 0 : vector<16x16xf32>, vector<16x16xf32> -> vector<32x16xf32>
    %44 = vector.extract_strided_slice %37 {offsets = [0, 64], sizes = [16, 16], strides = [1, 1]} : vector<16x96xf32> to vector<16x16xf32>
    %45 = vector.extract_strided_slice %37 {offsets = [0, 80], sizes = [16, 16], strides = [1, 1]} : vector<16x96xf32> to vector<16x16xf32>
    %46 = tpu.concatenate %44, %45 in 0 : vector<16x16xf32>, vector<16x16xf32> -> vector<32x16xf32>
    %47 = arith.truncf %40 : vector<32x16xf32> to vector<32x16xbf16>
    %48 = arith.truncf %43 : vector<32x16xf32> to vector<32x16xbf16>
    %cst_18 = arith.constant dense<0.000000e+00> : vector<32x32xf32>
    %49 = tpu.matmul %47, %48, %cst_18 {dimension_numbers = #tpu.dot_dimension_numbers<[1], [1], [0], [0], [0, 0, 1, 0], [], []>} : vector<32x16xbf16>, vector<32x16xbf16>, vector<32x32xf32> -> vector<32x32xf32>
    %50 = arith.addf %49, %1 : vector<32x32xf32>
    %cst_19 = arith.constant dense<0xFF800000> : vector<32xf32>
    %51 = vector.multi_reduction <maximumf>, %50, %cst_19 [1] : vector<32x32xf32> to vector<32xf32>
    %52 = vector.shape_cast %51 : vector<32xf32> to vector<32x1xf32>
    %53 = vector.broadcast %52 : vector<32x1xf32> to vector<32x32xf32>
    %54 = arith.subf %50, %53 : vector<32x32xf32>
    %55 = math.exp %54 : vector<32x32xf32>
    %cst_20 = arith.constant dense<0.000000e+00> : vector<32xf32>
    %56 = vector.multi_reduction <add>, %55, %cst_20 [1] : vector<32x32xf32> to vector<32xf32>
    %57 = vector.shape_cast %56 : vector<32xf32> to vector<32x1xf32>
    %58 = tpu.reciprocal %57 {approx = true} : vector<32x1xf32> -> vector<32x1xf32>
    %59 = vector.broadcast %58 : vector<32x1xf32> to vector<32x32xf32>
    %60 = arith.mulf %55, %59 : vector<32x32xf32>
    %61 = arith.truncf %60 : vector<32x32xf32> to vector<32x32xbf16>
    %62 = arith.truncf %46 : vector<32x16xf32> to vector<32x16xbf16>
    %cst_21 = arith.constant dense<0.000000e+00> : vector<32x16xf32>
    %63 = tpu.matmul %61, %62, %cst_21 {dimension_numbers = #tpu.dot_dimension_numbers<[1], [0], [0], [1], [0, 0, 1, 1], [], []>} : vector<32x32xbf16>, vector<32x16xbf16>, vector<32x16xf32> -> vector<32x16xf32>
    %64 = vector.extract_strided_slice %63 {offsets = [0, 0], sizes = [16, 16], strides = [1, 1]} : vector<32x16xf32> to vector<16x16xf32>
    %65 = vector.extract_strided_slice %63 {offsets = [16, 0], sizes = [16, 16], strides = [1, 1]} : vector<32x16xf32> to vector<16x16xf32>
    %66 = tpu.concatenate %64, %65 in 1 : vector<16x16xf32>, vector<16x16xf32> -> vector<16x32xf32>
    %67 = arith.truncf %66 : vector<16x32xf32> to vector<16x32xbf16>
    %cst_22 = arith.constant dense<0.000000e+00> : vector<16x32xf32>
    %68 = tpu.matmul %67, %29, %cst_22 {dimension_numbers = #tpu.dot_dimension_numbers<[1], [0], [0], [1], [0, 0, 1, 1], [], []>} : vector<16x32xbf16>, vector<32x32xbf16>, vector<16x32xf32> -> vector<16x32xf32>
    %c3 = arith.constant 3 : index
    %c0_23 = arith.constant 0 : index
    %69 = vector.load %arg5[%c3, %c0_23] : memref<20x128xf32, #tpu.memory_space<vmem>>, vector<1x32xf32>
    %70 = vector.broadcast %69 : vector<1x32xf32> to vector<16x32xf32>
    %71 = arith.addf %68, %70 : vector<16x32xf32>
    %72 = arith.addf %71, %25 : vector<16x32xf32>
    %c4 = arith.constant 4 : index
    %c0_24 = arith.constant 0 : index
    %73 = vector.load %arg5[%c4, %c0_24] : memref<20x128xf32, #tpu.memory_space<vmem>>, vector<1x32xf32>
    %c5 = arith.constant 5 : index
    %c0_25 = arith.constant 0 : index
    %74 = vector.load %arg5[%c5, %c0_25] : memref<20x128xf32, #tpu.memory_space<vmem>>, vector<1x32xf32>
    %cst_26 = arith.constant dense<0.000000e+00> : vector<16xf32>
    %75 = vector.multi_reduction <add>, %72, %cst_26 [1] : vector<16x32xf32> to vector<16xf32>
    %76 = vector.shape_cast %75 : vector<16xf32> to vector<16x1xf32>
    %cst_27 = arith.constant 3.200000e+01 : f32
    %77 = vector.broadcast %cst_27 : f32 to vector<16x1xf32>
    %78 = arith.divf %76, %77 : vector<16x1xf32>
    %79 = vector.broadcast %78 : vector<16x1xf32> to vector<16x32xf32>
    %80 = arith.subf %72, %79 : vector<16x32xf32>
    %81 = arith.mulf %80, %80 : vector<16x32xf32>
    %cst_28 = arith.constant dense<0.000000e+00> : vector<16xf32>
    %82 = vector.multi_reduction <add>, %81, %cst_28 [1] : vector<16x32xf32> to vector<16xf32>
    %83 = vector.shape_cast %82 : vector<16xf32> to vector<16x1xf32>
    %cst_29 = arith.constant 3.200000e+01 : f32
    %84 = vector.broadcast %cst_29 : f32 to vector<16x1xf32>
    %85 = arith.divf %83, %84 : vector<16x1xf32>
    %cst_30 = arith.constant 9.99999996E-13 : f32
    %86 = vector.broadcast %cst_30 : f32 to vector<16x1xf32>
    %87 = arith.addf %85, %86 : vector<16x1xf32>
    %88 = math.rsqrt %87 : vector<16x1xf32>
    %89 = vector.broadcast %78 : vector<16x1xf32> to vector<16x32xf32>
    %90 = arith.subf %72, %89 : vector<16x32xf32>
    %91 = vector.broadcast %88 : vector<16x1xf32> to vector<16x32xf32>
    %92 = arith.mulf %90, %91 : vector<16x32xf32>
    %93 = vector.broadcast %73 : vector<1x32xf32> to vector<16x32xf32>
    %94 = arith.mulf %92, %93 : vector<16x32xf32>
    %95 = vector.broadcast %74 : vector<1x32xf32> to vector<16x32xf32>
    %96 = arith.addf %94, %95 : vector<16x32xf32>
    %97 = arith.truncf %96 : vector<16x32xf32> to vector<16x32xbf16>
    %cst_31 = arith.constant dense<0.000000e+00> : vector<16x64xf32>
    %98 = tpu.matmul %97, %30, %cst_31 {dimension_numbers = #tpu.dot_dimension_numbers<[1], [0], [0], [1], [0, 0, 1, 1], [], []>} : vector<16x32xbf16>, vector<32x64xbf16>, vector<16x64xf32> -> vector<16x64xf32>
    %c6 = arith.constant 6 : index
    %c0_32 = arith.constant 0 : index
    %99 = vector.load %arg5[%c6, %c0_32] : memref<20x128xf32, #tpu.memory_space<vmem>>, vector<1x64xf32>
    %100 = vector.broadcast %99 : vector<1x64xf32> to vector<16x64xf32>
    %101 = arith.addf %98, %100 : vector<16x64xf32>
    %cst_33 = arith.constant 5.000000e-01 : f32
    %102 = vector.broadcast %cst_33 : f32 to vector<16x64xf32>
    %103 = arith.mulf %102, %101 : vector<16x64xf32>
    %cst_34 = arith.constant 4.471500e-02 : f32
    %104 = vector.broadcast %cst_34 : f32 to vector<16x64xf32>
    %105 = arith.mulf %104, %101 : vector<16x64xf32>
    %106 = arith.mulf %105, %101 : vector<16x64xf32>
    %107 = arith.mulf %106, %101 : vector<16x64xf32>
    %108 = arith.addf %101, %107 : vector<16x64xf32>
    %cst_35 = arith.constant 0.797884583 : f32
    %109 = vector.broadcast %cst_35 : f32 to vector<16x64xf32>
    %110 = arith.mulf %109, %108 : vector<16x64xf32>
    %111 = math.tanh %110 : vector<16x64xf32>
    %cst_36 = arith.constant 1.000000e+00 : f32
    %112 = vector.broadcast %cst_36 : f32 to vector<16x64xf32>
    %113 = arith.addf %112, %111 : vector<16x64xf32>
    %114 = arith.mulf %103, %113 : vector<16x64xf32>
    %115 = arith.truncf %114 : vector<16x64xf32> to vector<16x64xbf16>
    %cst_37 = arith.constant dense<0.000000e+00> : vector<16x32xf32>
    %116 = tpu.matmul %115, %32, %cst_37 {dimension_numbers = #tpu.dot_dimension_numbers<[1], [0], [0], [1], [0, 0, 1, 1], [], []>} : vector<16x64xbf16>, vector<64x32xbf16>, vector<16x32xf32> -> vector<16x32xf32>
    %c7 = arith.constant 7 : index
    %c0_38 = arith.constant 0 : index
    %117 = vector.load %arg5[%c7, %c0_38] : memref<20x128xf32, #tpu.memory_space<vmem>>, vector<1x32xf32>
    %118 = vector.broadcast %117 : vector<1x32xf32> to vector<16x32xf32>
    %119 = arith.addf %116, %118 : vector<16x32xf32>
    %120 = arith.addf %119, %96 : vector<16x32xf32>
    %c8 = arith.constant 8 : index
    %c0_39 = arith.constant 0 : index
    %121 = vector.load %arg5[%c8, %c0_39] : memref<20x128xf32, #tpu.memory_space<vmem>>, vector<1x32xf32>
    %c9 = arith.constant 9 : index
    %c0_40 = arith.constant 0 : index
    %122 = vector.load %arg5[%c9, %c0_40] : memref<20x128xf32, #tpu.memory_space<vmem>>, vector<1x32xf32>
    %cst_41 = arith.constant dense<0.000000e+00> : vector<16xf32>
    %123 = vector.multi_reduction <add>, %120, %cst_41 [1] : vector<16x32xf32> to vector<16xf32>
    %124 = vector.shape_cast %123 : vector<16xf32> to vector<16x1xf32>
    %cst_42 = arith.constant 3.200000e+01 : f32
    %125 = vector.broadcast %cst_42 : f32 to vector<16x1xf32>
    %126 = arith.divf %124, %125 : vector<16x1xf32>
    %127 = vector.broadcast %126 : vector<16x1xf32> to vector<16x32xf32>
    %128 = arith.subf %120, %127 : vector<16x32xf32>
    %129 = arith.mulf %128, %128 : vector<16x32xf32>
    %cst_43 = arith.constant dense<0.000000e+00> : vector<16xf32>
    %130 = vector.multi_reduction <add>, %129, %cst_43 [1] : vector<16x32xf32> to vector<16xf32>
    %131 = vector.shape_cast %130 : vector<16xf32> to vector<16x1xf32>
    %cst_44 = arith.constant 3.200000e+01 : f32
    %132 = vector.broadcast %cst_44 : f32 to vector<16x1xf32>
    %133 = arith.divf %131, %132 : vector<16x1xf32>
    %cst_45 = arith.constant 9.99999996E-13 : f32
    %134 = vector.broadcast %cst_45 : f32 to vector<16x1xf32>
    %135 = arith.addf %133, %134 : vector<16x1xf32>
    %136 = math.rsqrt %135 : vector<16x1xf32>
    %137 = vector.broadcast %126 : vector<16x1xf32> to vector<16x32xf32>
    %138 = arith.subf %120, %137 : vector<16x32xf32>
    %139 = vector.broadcast %136 : vector<16x1xf32> to vector<16x32xf32>
    %140 = arith.mulf %138, %139 : vector<16x32xf32>
    %141 = vector.broadcast %121 : vector<1x32xf32> to vector<16x32xf32>
    %142 = arith.mulf %140, %141 : vector<16x32xf32>
    %143 = vector.broadcast %122 : vector<1x32xf32> to vector<16x32xf32>
    %144 = arith.addf %142, %143 : vector<16x32xf32>
    %c1_46 = arith.constant 1 : index
    %c0_47 = arith.constant 0 : index
    %c0_48 = arith.constant 0 : index
    %145 = vector.load %arg2[%c1_46, %c0_47, %c0_48] : memref<2x32x192xbf16, #tpu.memory_space<vmem>>, vector<1x32x192xbf16>
    %146 = vector.shape_cast %145 : vector<1x32x192xbf16> to vector<32x192xbf16>
    %147 = vector.extract_strided_slice %146 {offsets = [0, 0], sizes = [32, 96], strides = [1, 1]} : vector<32x192xbf16> to vector<32x96xbf16>
    %148 = vector.extract_strided_slice %146 {offsets = [0, 96], sizes = [32, 32], strides = [1, 1]} : vector<32x192xbf16> to vector<32x32xbf16>
    %149 = vector.extract_strided_slice %146 {offsets = [0, 128], sizes = [32, 64], strides = [1, 1]} : vector<32x192xbf16> to vector<32x64xbf16>
    %c1_49 = arith.constant 1 : index
    %c0_50 = arith.constant 0 : index
    %c0_51 = arith.constant 0 : index
    %150 = vector.load %arg3[%c1_49, %c0_50, %c0_51] : memref<2x64x32xbf16, #tpu.memory_space<vmem>>, vector<1x64x32xbf16>
    %151 = vector.shape_cast %150 : vector<1x64x32xbf16> to vector<64x32xbf16>
    %152 = arith.truncf %144 : vector<16x32xf32> to vector<16x32xbf16>
    %cst_52 = arith.constant dense<0.000000e+00> : vector<16x96xf32>
    %153 = tpu.matmul %152, %147, %cst_52 {dimension_numbers = #tpu.dot_dimension_numbers<[1], [0], [0], [1], [0, 0, 1, 1], [], []>} : vector<16x32xbf16>, vector<32x96xbf16>, vector<16x96xf32> -> vector<16x96xf32>
    %c10 = arith.constant 10 : index
    %c0_53 = arith.constant 0 : index
    %154 = vector.load %arg5[%c10, %c0_53] : memref<20x128xf32, #tpu.memory_space<vmem>>, vector<1x96xf32>
    %155 = vector.broadcast %154 : vector<1x96xf32> to vector<16x96xf32>
    %156 = arith.addf %153, %155 : vector<16x96xf32>
    %157 = vector.extract_strided_slice %156 {offsets = [0, 0], sizes = [16, 16], strides = [1, 1]} : vector<16x96xf32> to vector<16x16xf32>
    %158 = vector.extract_strided_slice %156 {offsets = [0, 16], sizes = [16, 16], strides = [1, 1]} : vector<16x96xf32> to vector<16x16xf32>
    %159 = tpu.concatenate %157, %158 in 0 : vector<16x16xf32>, vector<16x16xf32> -> vector<32x16xf32>
    %160 = vector.extract_strided_slice %156 {offsets = [0, 32], sizes = [16, 16], strides = [1, 1]} : vector<16x96xf32> to vector<16x16xf32>
    %161 = vector.extract_strided_slice %156 {offsets = [0, 48], sizes = [16, 16], strides = [1, 1]} : vector<16x96xf32> to vector<16x16xf32>
    %162 = tpu.concatenate %160, %161 in 0 : vector<16x16xf32>, vector<16x16xf32> -> vector<32x16xf32>
    %163 = vector.extract_strided_slice %156 {offsets = [0, 64], sizes = [16, 16], strides = [1, 1]} : vector<16x96xf32> to vector<16x16xf32>
    %164 = vector.extract_strided_slice %156 {offsets = [0, 80], sizes = [16, 16], strides = [1, 1]} : vector<16x96xf32> to vector<16x16xf32>
    %165 = tpu.concatenate %163, %164 in 0 : vector<16x16xf32>, vector<16x16xf32> -> vector<32x16xf32>
    %166 = arith.truncf %159 : vector<32x16xf32> to vector<32x16xbf16>
    %167 = arith.truncf %162 : vector<32x16xf32> to vector<32x16xbf16>
    %cst_54 = arith.constant dense<0.000000e+00> : vector<32x32xf32>
    %168 = tpu.matmul %166, %167, %cst_54 {dimension_numbers = #tpu.dot_dimension_numbers<[1], [1], [0], [0], [0, 0, 1, 0], [], []>} : vector<32x16xbf16>, vector<32x16xbf16>, vector<32x32xf32> -> vector<32x32xf32>
    %169 = arith.addf %168, %1 : vector<32x32xf32>
    %cst_55 = arith.constant dense<0xFF800000> : vector<32xf32>
    %170 = vector.multi_reduction <maximumf>, %169, %cst_55 [1] : vector<32x32xf32> to vector<32xf32>
    %171 = vector.shape_cast %170 : vector<32xf32> to vector<32x1xf32>
    %172 = vector.broadcast %171 : vector<32x1xf32> to vector<32x32xf32>
    %173 = arith.subf %169, %172 : vector<32x32xf32>
    %174 = math.exp %173 : vector<32x32xf32>
    %cst_56 = arith.constant dense<0.000000e+00> : vector<32xf32>
    %175 = vector.multi_reduction <add>, %174, %cst_56 [1] : vector<32x32xf32> to vector<32xf32>
    %176 = vector.shape_cast %175 : vector<32xf32> to vector<32x1xf32>
    %177 = tpu.reciprocal %176 {approx = true} : vector<32x1xf32> -> vector<32x1xf32>
    %178 = vector.broadcast %177 : vector<32x1xf32> to vector<32x32xf32>
    %179 = arith.mulf %174, %178 : vector<32x32xf32>
    %180 = arith.truncf %179 : vector<32x32xf32> to vector<32x32xbf16>
    %181 = arith.truncf %165 : vector<32x16xf32> to vector<32x16xbf16>
    %cst_57 = arith.constant dense<0.000000e+00> : vector<32x16xf32>
    %182 = tpu.matmul %180, %181, %cst_57 {dimension_numbers = #tpu.dot_dimension_numbers<[1], [0], [0], [1], [0, 0, 1, 1], [], []>} : vector<32x32xbf16>, vector<32x16xbf16>, vector<32x16xf32> -> vector<32x16xf32>
    %183 = vector.extract_strided_slice %182 {offsets = [0, 0], sizes = [16, 16], strides = [1, 1]} : vector<32x16xf32> to vector<16x16xf32>
    %184 = vector.extract_strided_slice %182 {offsets = [16, 0], sizes = [16, 16], strides = [1, 1]} : vector<32x16xf32> to vector<16x16xf32>
    %185 = tpu.concatenate %183, %184 in 1 : vector<16x16xf32>, vector<16x16xf32> -> vector<16x32xf32>
    %186 = arith.truncf %185 : vector<16x32xf32> to vector<16x32xbf16>
    %cst_58 = arith.constant dense<0.000000e+00> : vector<16x32xf32>
    %187 = tpu.matmul %186, %148, %cst_58 {dimension_numbers = #tpu.dot_dimension_numbers<[1], [0], [0], [1], [0, 0, 1, 1], [], []>} : vector<16x32xbf16>, vector<32x32xbf16>, vector<16x32xf32> -> vector<16x32xf32>
    %c11 = arith.constant 11 : index
    %c0_59 = arith.constant 0 : index
    %188 = vector.load %arg5[%c11, %c0_59] : memref<20x128xf32, #tpu.memory_space<vmem>>, vector<1x32xf32>
    %189 = vector.broadcast %188 : vector<1x32xf32> to vector<16x32xf32>
    %190 = arith.addf %187, %189 : vector<16x32xf32>
    %191 = arith.addf %190, %144 : vector<16x32xf32>
    %c12 = arith.constant 12 : index
    %c0_60 = arith.constant 0 : index
    %192 = vector.load %arg5[%c12, %c0_60] : memref<20x128xf32, #tpu.memory_space<vmem>>, vector<1x32xf32>
    %c13 = arith.constant 13 : index
    %c0_61 = arith.constant 0 : index
    %193 = vector.load %arg5[%c13, %c0_61] : memref<20x128xf32, #tpu.memory_space<vmem>>, vector<1x32xf32>
    %cst_62 = arith.constant dense<0.000000e+00> : vector<16xf32>
    %194 = vector.multi_reduction <add>, %191, %cst_62 [1] : vector<16x32xf32> to vector<16xf32>
    %195 = vector.shape_cast %194 : vector<16xf32> to vector<16x1xf32>
    %cst_63 = arith.constant 3.200000e+01 : f32
    %196 = vector.broadcast %cst_63 : f32 to vector<16x1xf32>
    %197 = arith.divf %195, %196 : vector<16x1xf32>
    %198 = vector.broadcast %197 : vector<16x1xf32> to vector<16x32xf32>
    %199 = arith.subf %191, %198 : vector<16x32xf32>
    %200 = arith.mulf %199, %199 : vector<16x32xf32>
    %cst_64 = arith.constant dense<0.000000e+00> : vector<16xf32>
    %201 = vector.multi_reduction <add>, %200, %cst_64 [1] : vector<16x32xf32> to vector<16xf32>
    %202 = vector.shape_cast %201 : vector<16xf32> to vector<16x1xf32>
    %cst_65 = arith.constant 3.200000e+01 : f32
    %203 = vector.broadcast %cst_65 : f32 to vector<16x1xf32>
    %204 = arith.divf %202, %203 : vector<16x1xf32>
    %cst_66 = arith.constant 9.99999996E-13 : f32
    %205 = vector.broadcast %cst_66 : f32 to vector<16x1xf32>
    %206 = arith.addf %204, %205 : vector<16x1xf32>
    %207 = math.rsqrt %206 : vector<16x1xf32>
    %208 = vector.broadcast %197 : vector<16x1xf32> to vector<16x32xf32>
    %209 = arith.subf %191, %208 : vector<16x32xf32>
    %210 = vector.broadcast %207 : vector<16x1xf32> to vector<16x32xf32>
    %211 = arith.mulf %209, %210 : vector<16x32xf32>
    %212 = vector.broadcast %192 : vector<1x32xf32> to vector<16x32xf32>
    %213 = arith.mulf %211, %212 : vector<16x32xf32>
    %214 = vector.broadcast %193 : vector<1x32xf32> to vector<16x32xf32>
    %215 = arith.addf %213, %214 : vector<16x32xf32>
    %216 = arith.truncf %215 : vector<16x32xf32> to vector<16x32xbf16>
    %cst_67 = arith.constant dense<0.000000e+00> : vector<16x64xf32>
    %217 = tpu.matmul %216, %149, %cst_67 {dimension_numbers = #tpu.dot_dimension_numbers<[1], [0], [0], [1], [0, 0, 1, 1], [], []>} : vector<16x32xbf16>, vector<32x64xbf16>, vector<16x64xf32> -> vector<16x64xf32>
    %c14 = arith.constant 14 : index
    %c0_68 = arith.constant 0 : index
    %218 = vector.load %arg5[%c14, %c0_68] : memref<20x128xf32, #tpu.memory_space<vmem>>, vector<1x64xf32>
    %219 = vector.broadcast %218 : vector<1x64xf32> to vector<16x64xf32>
    %220 = arith.addf %217, %219 : vector<16x64xf32>
    %cst_69 = arith.constant 5.000000e-01 : f32
    %221 = vector.broadcast %cst_69 : f32 to vector<16x64xf32>
    %222 = arith.mulf %221, %220 : vector<16x64xf32>
    %cst_70 = arith.constant 4.471500e-02 : f32
    %223 = vector.broadcast %cst_70 : f32 to vector<16x64xf32>
    %224 = arith.mulf %223, %220 : vector<16x64xf32>
    %225 = arith.mulf %224, %220 : vector<16x64xf32>
    %226 = arith.mulf %225, %220 : vector<16x64xf32>
    %227 = arith.addf %220, %226 : vector<16x64xf32>
    %cst_71 = arith.constant 0.797884583 : f32
    %228 = vector.broadcast %cst_71 : f32 to vector<16x64xf32>
    %229 = arith.mulf %228, %227 : vector<16x64xf32>
    %230 = math.tanh %229 : vector<16x64xf32>
    %cst_72 = arith.constant 1.000000e+00 : f32
    %231 = vector.broadcast %cst_72 : f32 to vector<16x64xf32>
    %232 = arith.addf %231, %230 : vector<16x64xf32>
    %233 = arith.mulf %222, %232 : vector<16x64xf32>
    %234 = arith.truncf %233 : vector<16x64xf32> to vector<16x64xbf16>
    %cst_73 = arith.constant dense<0.000000e+00> : vector<16x32xf32>
    %235 = tpu.matmul %234, %151, %cst_73 {dimension_numbers = #tpu.dot_dimension_numbers<[1], [0], [0], [1], [0, 0, 1, 1], [], []>} : vector<16x64xbf16>, vector<64x32xbf16>, vector<16x32xf32> -> vector<16x32xf32>
    %c15 = arith.constant 15 : index
    %c0_74 = arith.constant 0 : index
    %236 = vector.load %arg5[%c15, %c0_74] : memref<20x128xf32, #tpu.memory_space<vmem>>, vector<1x32xf32>
    %237 = vector.broadcast %236 : vector<1x32xf32> to vector<16x32xf32>
    %238 = arith.addf %235, %237 : vector<16x32xf32>
    %239 = arith.addf %238, %215 : vector<16x32xf32>
    %c16 = arith.constant 16 : index
    %c0_75 = arith.constant 0 : index
    %240 = vector.load %arg5[%c16, %c0_75] : memref<20x128xf32, #tpu.memory_space<vmem>>, vector<1x32xf32>
    %c17 = arith.constant 17 : index
    %c0_76 = arith.constant 0 : index
    %241 = vector.load %arg5[%c17, %c0_76] : memref<20x128xf32, #tpu.memory_space<vmem>>, vector<1x32xf32>
    %cst_77 = arith.constant dense<0.000000e+00> : vector<16xf32>
    %242 = vector.multi_reduction <add>, %239, %cst_77 [1] : vector<16x32xf32> to vector<16xf32>
    %243 = vector.shape_cast %242 : vector<16xf32> to vector<16x1xf32>
    %cst_78 = arith.constant 3.200000e+01 : f32
    %244 = vector.broadcast %cst_78 : f32 to vector<16x1xf32>
    %245 = arith.divf %243, %244 : vector<16x1xf32>
    %246 = vector.broadcast %245 : vector<16x1xf32> to vector<16x32xf32>
    %247 = arith.subf %239, %246 : vector<16x32xf32>
    %248 = arith.mulf %247, %247 : vector<16x32xf32>
    %cst_79 = arith.constant dense<0.000000e+00> : vector<16xf32>
    %249 = vector.multi_reduction <add>, %248, %cst_79 [1] : vector<16x32xf32> to vector<16xf32>
    %250 = vector.shape_cast %249 : vector<16xf32> to vector<16x1xf32>
    %cst_80 = arith.constant 3.200000e+01 : f32
    %251 = vector.broadcast %cst_80 : f32 to vector<16x1xf32>
    %252 = arith.divf %250, %251 : vector<16x1xf32>
    %cst_81 = arith.constant 9.99999996E-13 : f32
    %253 = vector.broadcast %cst_81 : f32 to vector<16x1xf32>
    %254 = arith.addf %252, %253 : vector<16x1xf32>
    %255 = math.rsqrt %254 : vector<16x1xf32>
    %256 = vector.broadcast %245 : vector<16x1xf32> to vector<16x32xf32>
    %257 = arith.subf %239, %256 : vector<16x32xf32>
    %258 = vector.broadcast %255 : vector<16x1xf32> to vector<16x32xf32>
    %259 = arith.mulf %257, %258 : vector<16x32xf32>
    %260 = vector.broadcast %240 : vector<1x32xf32> to vector<16x32xf32>
    %261 = arith.mulf %259, %260 : vector<16x32xf32>
    %262 = vector.broadcast %241 : vector<1x32xf32> to vector<16x32xf32>
    %263 = arith.addf %261, %262 : vector<16x32xf32>
    %264 = vector.extract_strided_slice %263 {offsets = [0, 0], sizes = [1, 32], strides = [1, 1]} : vector<16x32xf32> to vector<1x32xf32>
    %265 = vector.extract_strided_slice %263 {offsets = [8, 0], sizes = [1, 32], strides = [1, 1]} : vector<16x32xf32> to vector<1x32xf32>
    %266 = tpu.concatenate %264, %265 in 0 : vector<1x32xf32>, vector<1x32xf32> -> vector<2x32xf32>
    %c0_82 = arith.constant 0 : index
    %c0_83 = arith.constant 0 : index
    %267 = vector.load %arg4[%c0_82, %c0_83] : memref<32x160xbf16, #tpu.memory_space<vmem>>, vector<32x160xbf16>
    %268 = vector.extract_strided_slice %267 {offsets = [0, 0], sizes = [32, 32], strides = [1, 1]} : vector<32x160xbf16> to vector<32x32xbf16>
    %269 = vector.extract_strided_slice %267 {offsets = [0, 32], sizes = [32, 128], strides = [1, 1]} : vector<32x160xbf16> to vector<32x128xbf16>
    %270 = arith.truncf %266 : vector<2x32xf32> to vector<2x32xbf16>
    %cst_84 = arith.constant dense<0.000000e+00> : vector<2x32xf32>
    %271 = tpu.matmul %270, %268, %cst_84 {dimension_numbers = #tpu.dot_dimension_numbers<[1], [0], [0], [1], [0, 0, 1, 1], [], []>} : vector<2x32xbf16>, vector<32x32xbf16>, vector<2x32xf32> -> vector<2x32xf32>
    %c18 = arith.constant 18 : index
    %c0_85 = arith.constant 0 : index
    %272 = vector.load %arg5[%c18, %c0_85] : memref<20x128xf32, #tpu.memory_space<vmem>>, vector<1x32xf32>
    %273 = vector.broadcast %272 : vector<1x32xf32> to vector<2x32xf32>
    %274 = arith.addf %271, %273 : vector<2x32xf32>
    %275 = math.tanh %274 : vector<2x32xf32>
    %276 = arith.truncf %275 : vector<2x32xf32> to vector<2x32xbf16>
    %cst_86 = arith.constant dense<0.000000e+00> : vector<2x128xf32>
    %277 = tpu.matmul %276, %269, %cst_86 {dimension_numbers = #tpu.dot_dimension_numbers<[1], [0], [0], [1], [0, 0, 1, 1], [], []>} : vector<2x32xbf16>, vector<32x128xbf16>, vector<2x128xf32> -> vector<2x128xf32>
    %c19 = arith.constant 19 : index
    %c0_87 = arith.constant 0 : index
    %278 = vector.load %arg5[%c19, %c0_87] : memref<20x128xf32, #tpu.memory_space<vmem>>, vector<1x128xf32>
    %279 = vector.broadcast %278 : vector<1x128xf32> to vector<2x128xf32>
    %280 = arith.addf %277, %279 : vector<2x128xf32>
    %c0_88 = arith.constant 0 : index
    %c0_89 = arith.constant 0 : index
    %281 = vector.load %arg6[%c0_88, %c0_89] : memref<2x128xf32, #tpu.memory_space<vmem>>, vector<2x128xf32>
    tpu.vector_store %arg6[%c0_88, %c0_89], %280 {strides = array<i32>} : memref<2x128xf32, #tpu.memory_space<vmem>>, vector<2x128xf32>,
    return
  }
}

</mosaic_0001>

<bundles_post_ra>
// kernel: tile.12
= control target key start
LH: loop header
LB: loop body
LE: loop exit
PB: predicated region body
PF: predicated region fallthrough
CT: control target
= control target key end

     0   :  { %s22_s0 = inlined_call_operand.vmem [shape: s32[16], index: 0, kind: input, shape index: {}]   ;;  %s23_s1 = inlined_call_operand.vmem [shape: s32[2,16], index: 1, kind: output, shape index: {}]  }
   0x1   :  { %v4_v0 = vld [vmem:[%s22_s0] ss:$0 sm:$0xff] }
   0x2   :  { %5 = vst [vmem:[%s23_s1] sm:$0x3] %v4_v0 }

// kernel: eq.22
= control target key start
LH: loop header
LB: loop body
LE: loop exit
PB: predicated region body
PF: predicated region fallthrough
CT: control target
= control target key end

     0   :  { %vm7_vm0 = vcmask 130048   ;;  %vm13_vm1 = vcmask 261248   ;;  %s39_s0 = inlined_call_operand.vmem [shape: s32[2,16], index: 0, kind: input, shape index: {}]   ;;  %s40_s1 = inlined_call_operand.vmem [shape: s32[32], index: 1, kind: output, shape index: {}]  }
   0x1   :  { %v4_v0 = vld [vmem:[%s39_s0] sm:$0x3]  ;;  %s22_s0 = smov 16  }
   0x2   :  { %5 = vst [vmem:[#allocation1] sm:$0x3] %v4_v0 }
   0x9   :  { %v10_v1 = vld [vmem:[#allocation1 + $0x1] sm:$0x1]   ;;  %v6_v2 = vld [vmem:[#allocation1] sm:$0x1]  }
   0xa   :  { %11 = vrot.lane.b32.xlu0 %v10_v1, %s22_s0  ;;  %8 = vst.msk [vmem:[#allocation0] sm:$0x1] %vm7_vm0, %v6_v2  }
  0x7c   :  { %v12_v3 = vpop.permute.xlu0 %11  }
  0x7d   :  { %14 = vst.msk [vmem:[#allocation0] sm:$0x1] %vm13_vm1, %v12_v3  }
  0x84   :  { %v18_v4 = vld [vmem:[#allocation0] sm:$0x1] }
  0x85   :  { %20 = vst [vmem:[%s40_s1] sm:$0x1] %v18_v4 }

// kernel: emotion_finbert_forward.1
= control target key start
LH: loop header
LB: loop body
LE: loop exit
PB: predicated region body
PF: predicated region fallthrough
CT: control target
= control target key end

     0   :  { %vm33_vm0 = vcmask 261120   ;;  %s2117_s0 = inlined_call_operand.vmem [shape: f32[16,32], index: 0, kind: input, shape index: {}]   ;;  %s2118_s1 = inlined_call_operand.vmem [shape: f32[32,32], index: 1, kind: input, shape index: {}]   ;;  %s2119_s2 = inlined_call_operand.vmem [shape: bf16[2,32,192], index: 2, kind: input, shape index: {}]   ;;  %s2120_s3 = inlined_call_operand.vmem [shape: bf16[2,64,32], index: 3, kind: input, shape index: {}]   ;;  %s2121_s4 = inlined_call_operand.vmem [shape: bf16[32,160], index: 4, kind: input, shape index: {}]   ;;  %s2122_s5 = inlined_call_operand.vmem [shape: f32[20,128], index: 5, kind: input, shape index: {}]   ;;  %s2123_s6 = inlined_call_operand.hbm [shape: f32[2,128], index: 6, kind: output, shape index: {}]  }
   0x1   :  { %v25_v0 = vld [vmem:[%s2117_s0] sm:$0xff]  ;;  %v26_v1 = vld [vmem:[%s2117_s0 + $0x8] sm:$0xff] }
   0x2   :  { %v34_v2 = vsel %vm33_vm0, %v25_v0, 0.0  ;;  %v37_v3 = vsel %vm33_vm0, %v26_v1, 0.0 }
   0x3   :  { %35 = vadd.xlane.f32.xlu0 %v34_v2 }
   0x7   :  { %38 = vadd.xlane.f32.xlu0 %v37_v3 }
   0x8   :  { %11 = vsyncpa [#allocation3], 0  ;;  %v1787_v14 = vld [vmem:[%s2119_s2] ss:$8 sps:$4 sm:$0xff]   ;;  %v1731_v15 = vmov 0.0   ;;  %vm1732_vm1 = vmmov 0  }
   0x9   :  { %1467 = vmatprep.subr.bf16.mxu0 %v1731_v15  ;;  %v1794_v16 = vld [vmem:[%s2119_s2 + $0x10] ss:$8 sps:$4 sm:$0xff]   ;;  %1471 = vmatprep.mubr.msk.bf16.mxu0 %vm1732_vm1, %v1731_v15  ;;  %v1347_v25 = vld [vmem:[%s2122_s5] ss:$0 sm:$0xff]  ;;  %v1348_v29 = vld [vmem:[%s2122_s5 + $0x1] ss:$0 sm:$0xff] }
   0xa   :  { %1468 = vmatpush3.bf16.msra.mxu0 %v1787_v14  ;;  %v1349_v34 = vld [vmem:[%s2122_s5 + $0x2] ss:$0 sm:$0xff]  ;;  %vm163_vm2 = vcmask 130048   ;;  %s1733_s10 = smov 112   ;;  %s1734_s11 = smov 96   ;;  %v1847_v53 = vld [vmem:[%s2118_s1 + $0x10] sm:$0xff] }
   0xb   :  { %1469 = vmatprep.subr.bf16.mxu0 %v1731_v15  ;;  %v1621_v51 = vld [vmem:[%s2119_s2 + $0x4] ss:$8 sps:$4 sm:$0xff]   ;;  %v1624_v52 = vld [vmem:[%s2119_s2 + $0x14] ss:$8 sps:$4 sm:$0xff]   ;;  %s1736_s24 = smov 32   ;;  %s1737_s0 = smov 16  }
   0xc   :  { %v1852_v54 = vld [vmem:[%s2118_s1] sm:$0xff]  ;;  %v1858_v58 = vld [vmem:[%s2118_s1 + $0x8] sm:$0xff]  ;;  %v1865_v63 = vld [vmem:[%s2118_s1 + $0x18] sm:$0xff]  ;;  %s1735_s1 = smov 64   ;;  %vm546_vm3 = vcmask 523264   ;;  %vm1196_vm4 = vcmask 1040384  }
   0xd   :  { %vm1284_vm5 = vcmask 785408   ;;  %s1738_s14 = smov [#allocation2]  }
   0xe   :  { %1470 = vmatpush3.bf16.msra.mxu0 %v1794_v16  ;;  %s1339_s15 = sshll.u32 %s1738_s14, 4  ;;  %s1340_s15 = int_to_ptr.vmem [resolvable:$true] %s1339_s15 }
   0xf   :  { %s1707_s16 = scalar_lea.vmem %s1340_s15, 32  ;;  %p1712_p1 = scmp.lt.s32.totalorder %s1340_s15, %s1340_s15 }
  0x10   :  { %p1708_p0 = scmp.ne.s32.totalorder %s1340_s15, %s1707_s16  ;;  %p1713_p2 = scmp.lt.s32.totalorder %s1707_s16, %s1707_s16 }
  0x12   :  { %p1714_p3 = por %p1713_p2, %p1712_p1 }
  0x14   :  { %p1715_p4 = pnand %p1714_p3, %p1708_p0 }
  0x90   :  { %v36_v4 = vpop.xlane.xlu0 %35 }
  0x91   :  { %v41_v5 = vmul.f32 0.03125, %v36_v4 }
  0x93   :  { %v43_v6 = vsub.f32 %v25_v0, %v41_v5 }
  0x94   :  { %v39_v7 = vpop.xlane.xlu0 %38 }
  0x95   :  { %v42_v8 = vmul.f32 0.03125, %v39_v7  ;;  %v45_v9 = vmul.f32 %v43_v6, %v43_v6 }
  0x97   :  { %v44_v10 = vsub.f32 %v26_v1, %v42_v8  ;;  %v47_v11 = vsel %vm33_vm0, %v45_v9, 0.0 }
  0x98   :  { %48 = vadd.xlane.f32.xlu1 %v47_v11 }
  0x99   :  { %v46_v12 = vmul.f32 %v44_v10, %v44_v10 }
  0x9b   :  { %v50_v13 = vsel %vm33_vm0, %v46_v12, 0.0 }
  0x9c   :  { %51 = vadd.xlane.f32.xlu1 %v50_v13 }
 0x125   :  { %v49_v17 = vpop.xlane.xlu1 %48 }
 0x126   :  { %v53_v18 = vmul.f32 0.03125, %v49_v17 }
 0x128   :  { %v55_v19 = vadd.f32 1e-12, %v53_v18 }
 0x129   :  { %v52_v20 = vpop.xlane.xlu1 %51 }
 0x12a   :  { %1645 = vrsqrt.f32 %v55_v19  ;;  %v54_v21 = vmul.f32 0.03125, %v52_v20 }
 0x12c   :  { %v56_v22 = vadd.f32 1e-12, %v54_v21 }
 0x12e   :  { %1647 = vrsqrt.f32 %v56_v22 }
 0x134   :  { %v1646_v23 = vpop.eup %1645 }
 0x135   :  { %v59_v24 = vmul.f32 %v1646_v23, %v43_v6 }
 0x137   :  { %v65_v28 = vmul.f32 %v1347_v25, %v59_v24 }
 0x138   :  { %v1648_v26 = vpop.eup %1647 }
 0x139   :  { %v60_v27 = vmul.f32 %v1648_v26, %v44_v10  ;;  %v1806_v31 = vadd.f32 %v1348_v29, %v65_v28 }
 0x13b   :  { %v66_v30 = vmul.f32 %v1347_v25, %v60_v27 }
 0x13d   :  { %v1808_v32 = vadd.f32 %v1348_v29, %v66_v30 }
 0x13f   :  { %v85_v33 = vpack.c.bf16 %v1808_v32, %v1806_v31 }
 0x141   :  { %1472 = vmatmul.mubr.msk.bf16.vlgmr.msra.gmra.mrb[0].mxu0 %vm33_vm0, %v85_v33 }
 0x214   :  { %v140_v35 = vpop.f32.mrb[0].mxu0 }
 0x215   :  { %v1473_v36 = vpop.f32.mrb[1].mxu0  ;;  %v141_v38 = vadd.f32 %v1349_v34, %v140_v35 }
 0x216   :  { %v143_v37 = vpop.f32.mrb[2].mxu0 }
 0x217   :  { %v144_v39 = vadd.f32 %v1349_v34, %v143_v37  ;;  %v1474_v40 = vpop.f32.mrb[3].mxu0 }
 0x219   :  { %v1599_v41 = vpack.i.bf16 %v144_v39, %v141_v38  ;;  %v1816_v42 = vpack.c.bf16 %v144_v39, %v141_v38 }
 0x21b   :  { %1600 = vrot.lane.b32.xlu0 %v1599_v41, %s1733_s10  ;;  %159 = vrot.lane.b32.xlu1 %v1816_v42, %s1734_s11 }
 0x21c   :  { %1479 = vmatprep.mubr.msk.bf16.mxu1 %vm163_vm2, %v1816_v42 }
 0x28d   :  { %v1601_v43 = vpop.permute.xlu0 %1600  ;;  %v160_v44 = vpop.permute.xlu1 %159 }
 0x28e   :  { %v1603_v45 = vunpack.i.h.bf16 %v1601_v43  ;;  %v1602_v46 = vunpack.i.l.bf16 %v1601_v43  ;;  %1587 = vmatprep.subr.msk.bf16.mxu1 %vm163_vm2, %v160_v44  ;;  %v171_v47 = vsel %vm163_vm2, %v160_v44, 0 }
 0x28f   :  { %1476 = vmatpush3.bf16.xpose.msra.mxu1 %v171_v47 }
 0x290   :  { %v1825_v48 = vpack.c.bf16 %v1603_v45, %v1602_v46 }
 0x292   :  { %161 = vrot.lane.b32.xlu1 %v1825_v48, %s1734_s11 }
 0x304   :  { %v162_v49 = vpop.permute.xlu1 %161 }
 0x305   :  { %1588 = vmatprep.subr.msk.bf16.mxu1 %vm163_vm2, %v162_v49  ;;  %v174_v50 = vsel %vm163_vm2, %v162_v49, 0 }
 0x306   :  { %1478 = vmatpush3.bf16.xpose.msra.mxu1 %v174_v50 }
 0x307   :  { %1499 = vmatprep.subr.bf16.mxu1 %v1731_v15 }
 0x30d   :  { %1480 = vmatmul.mubr.msk.bf16.vlgmr.msra.gmra.mrb[0].mxu1 %vm163_vm2, %v1825_v48 }
 0x30e   :  { %1500 = vmatpush3.bf16.msra.mxu1 %v1621_v51  ;;  %1503 = vmatprep.mubr.msk.bf16.mxu1 %vm1732_vm1, %v1731_v15 }
 0x30f   :  { %1501 = vmatprep.subr.bf16.mxu1 %v1731_v15 }
 0x312   :  { %1502 = vmatpush3.bf16.msra.mxu1 %v1624_v52 }
 0x313   :  { %1519 = vmatprep.subr.bf16.mxu1 %v1731_v15 }
 0x3e0   :  { %v1481_v55 = vpop.f32.mrb[0].mxu1 }
 0x3e1   :  { %v219_v56 = vadd.f32 %v1481_v55, %v1847_v53  ;;  %v210_v57 = vpop.f32.mrb[1].mxu1 }
 0x3e2   :  { %v211_v59 = vadd.f32 %v210_v57, %v1852_v54  ;;  %v1482_v60 = vpop.f32.mrb[2].mxu1 }
 0x3e3   :  { %v213_v61 = vpop.f32.mrb[3].mxu1  ;;  %v231_v62 = vsel %vm33_vm0, %v219_v56, -inf  ;;  %v222_v3 = vadd.f32 %v1482_v60, %v1865_v63 }
 0x3e4   :  { %v214_v0 = vadd.f32 %v213_v61, %v1858_v58  ;;  %232 = vmax.xlane.f32.xlu0 %v231_v62  ;;  %v225_v1 = vsel %vm33_vm0, %v211_v59, -inf }
 0x3e5   :  { %226 = vmax.xlane.f32.xlu1 %v225_v1  ;;  %v234_v4 = vsel %vm33_vm0, %v222_v3, -inf }
 0x3e6   :  { %v228_v2 = vsel %vm33_vm0, %v214_v0, -inf }
 0x3e8   :  { %229 = vmax.xlane.f32.xlu0 %v228_v2 }
 0x3ec   :  { %235 = vmax.xlane.f32.xlu0 %v234_v4 }
 0x471   :  { %v233_v5 = vpop.xlane.xlu0 %232 }
 0x472   :  { %v239_v6 = vsub.f32 %v219_v56, %v233_v5  ;;  %v227_v7 = vpop.xlane.xlu1 %226 }
 0x473   :  { %v237_v8 = vsub.f32 %v211_v59, %v227_v7 }
 0x474   :  { %v245_v9 = vmul.f32 1.442695, %v239_v6 }
 0x475   :  { %v241_v10 = vmul.f32 1.442695, %v237_v8  ;;  %v230_v11 = vpop.xlane.xlu0 %229 }
 0x476   :  { %1649 = vpow2.f32 %v245_v9  ;;  %v238_v12 = vsub.f32 %v214_v0, %v230_v11 }
 0x477   :  { %1651 = vpow2.f32 %v241_v10 }
 0x478   :  { %v243_v18 = vmul.f32 1.442695, %v238_v12 }
 0x479   :  { %v236_v13 = vpop.xlane.xlu0 %235 }
 0x47a   :  { %v240_v17 = vsub.f32 %v222_v3, %v236_v13 }
 0x47c   :  { %v247_v19 = vmul.f32 1.442695, %v240_v17 }
 0x47e   :  { %1653 = vpow2.f32 %v247_v19 }
 0x47f   :  { %1655 = vpow2.f32 %v243_v18 }
 0x480   :  { %v1650_v20 = vpop.eup %1649 }
 0x481   :  { %v255_v21 = vsel %vm33_vm0, %v1650_v20, 0.0  ;;  %v1652_v22 = vpop.eup %1651 }
 0x482   :  { %256 = vadd.xlane.f32.xlu1 %v255_v21  ;;  %v249_v23 = vsel %vm33_vm0, %v1652_v22, 0.0 }
 0x486   :  { %250 = vadd.xlane.f32.xlu1 %v249_v23 }
 0x488   :  { %v1654_v24 = vpop.eup %1653 }
 0x489   :  { %v258_v25 = vsel %vm33_vm0, %v1654_v24, 0.0  ;;  %v1656_v26 = vpop.eup %1655 }
 0x48a   :  { %259 = vadd.xlane.f32.xlu0 %v258_v25  ;;  %v252_v27 = vsel %vm33_vm0, %v1656_v26, 0.0 }
 0x48e   :  { %253 = vadd.xlane.f32.xlu0 %v252_v27  ;;  %v1359_v27 = vld [vmem:[%s2122_s5 + $0x4] ss:$0 sm:$0xff] }
 0x497   :  { %271 = vrot.lane.b32.xlu1 %v1816_v42, %s1735_s1 }
 0x49b   :  { %348 = vrot.lane.b32.xlu1 %v1787_v14, %s1736_s24 }
 0x4a4   :  { %273 = vrot.lane.b32.xlu0 %v1825_v48, %s1735_s1 }
 0x50f   :  { %v257_v28 = vpop.xlane.xlu1 %256 }
 0x513   :  { %v251_v29 = vpop.xlane.xlu1 %250 }
 0x517   :  { %v260_v30 = vpop.xlane.xlu0 %259  ;;  %v272_v33 = vpop.permute.xlu1 %271 }
 0x518   :  { %1483 = vmatprep.subr.bf16.mxu0 %v272_v33  ;;  %1657 = vrcp.f32 %v260_v30 }
 0x519   :  { %1484 = vmatpush3.bf16.msra.mxu0 %v272_v33  ;;  %1659 = vrcp.f32 %v251_v29  ;;  %v1360_v33 = vld [vmem:[%s2122_s5 + $0x5] ss:$0 sm:$0xff] }
 0x51a   :  { %1661 = vrcp.f32 %v257_v28 }
 0x51b   :  { %v254_v34 = vpop.xlane.xlu0 %253  ;;  %v349_v46 = vpop.permute.xlu1 %348 }
 0x51c   :  { %1663 = vrcp.f32 %v254_v34 }
 0x51f   :  { %v274_v35 = vpop.permute.xlu0 %273 }
 0x520   :  { %1485 = vmatprep.subr.bf16.mxu0 %v274_v35 }
 0x521   :  { %1486 = vmatpush3.bf16.msra.mxu0 %v274_v35 }
 0x522   :  { %1491 = vmatprep.subr.bf16.mxu0 %v1731_v15  ;;  %v1658_v36 = vpop.eup %1657 }
 0x523   :  { %v1660_v37 = vpop.eup %1659  ;;  %v268_v40 = vmul.f32 %v1658_v36, %v1654_v24 }
 0x524   :  { %v1662_v38 = vpop.eup %1661  ;;  %v265_v41 = vmul.f32 %v1660_v37, %v1652_v22 }
 0x525   :  { %v267_v43 = vmul.f32 %v1662_v38, %v1650_v20  ;;  %v1625_v38 = vld [vmem:[%s2120_s3] sm:$0xff]  }
 0x526   :  { %v1664_v39 = vpop.eup %1663 }
 0x527   :  { %v266_v42 = vmul.f32 %v1664_v39, %v1656_v26  ;;  %v270_v45 = vpack.c.bf16 %v268_v40, %v267_v43  ;;  %v1626_v39 = vld [vmem:[%s2120_s3 + $0x8] sm:$0xff]   ;;  %v1627_v40 = vld [vmem:[%s2120_s3 + $0x10] sm:$0xff]  }
 0x529   :  { %v269_v44 = vpack.c.bf16 %v266_v42, %v265_v41  ;;  %v1628_v41 = vld [vmem:[%s2120_s3 + $0x18] sm:$0xff]   ;;  %v1361_v42 = vld [vmem:[%s2122_s5 + $0x6] ss:$0 sm:$0xff] }
 0x52b   :  { %1487 = vmatprep.mubr.msk.bf16.mxu0 %vm33_vm0, %v269_v44 }
 0x52c   :  { %1488 = vmatmul.mubr.msk.bf16.vlgmr.msra.gmra.mrb[4].mxu0 %vm33_vm0, %v270_v45 }
 0x52d   :  { %1495 = vmatprep.mubr.msk.bf16.mxu0 %vm1732_vm1, %v1731_v15  ;;  %1492 = vmatpush3.bf16.msra.mxu0 %v349_v46 }
 0x52e   :  { %1493 = vmatprep.subr.bf16.mxu0 %v1731_v15 }
 0x5ff   :  { %v1489_v47 = vpop.f32.mrb[4].mxu0 }
 0x600   :  { %v317_v48 = vpop.f32.mrb[5].mxu0 }
 0x601   :  { %v1490_v49 = vpop.f32.mrb[6].mxu0 }
 0x602   :  { %v1604_v50 = vpack.i.bf16 %v1490_v49, %v1489_v47  ;;  %v320_v51 = vpop.f32.mrb[7].mxu0 }
 0x604   :  { %1605 = vrot.lane.b32.xlu1 %v1604_v50, %s1737_s0 }
 0x608   :  { %350 = vrot.lane.b32.xlu1 %v1794_v16, %s1736_s24  ;;  %v1357_v16 = vld [vmem:[%s2122_s5 + $0x3] ss:$0 sm:$0xff] }
 0x676   :  { %v1606_v52 = vpop.permute.xlu1 %1605 }
 0x677   :  { %v1608_v55 = vunpack.i.h.bf16 %v1606_v52  ;;  %v1607_v56 = vunpack.i.l.bf16 %v1606_v52 }
 0x679   :  { %v340_v14 = vsel %vm163_vm2, %v317_v48, %v1607_v56  ;;  %v341_v57 = vsel %vm163_vm2, %v320_v51, %v1608_v55 }
 0x67a   :  { %v342_v59 = vpack.c.bf16 %v341_v57, %v340_v14  ;;  %v351_v60 = vpop.permute.xlu1 %350 }
 0x67b   :  { %1494 = vmatpush3.bf16.msra.mxu0 %v351_v60 }
 0x67c   :  { %1507 = vmatprep.subr.bf16.mxu0 %v1731_v15 }
 0x67e   :  { %1496 = vmatmul.mubr.msk.bf16.vlgmr.msra.gmra.mrb[8].mxu0 %vm33_vm0, %v342_v59 }
 0x67f   :  { %1515 = vmatprep.mubr.msk.bf16.mxu0 %vm1732_vm1, %v1731_v15  ;;  %1508 = vmatpush3.bf16.msra.mxu0 %v1625_v38 }
 0x680   :  { %1509 = vmatprep.subr.bf16.mxu0 %v1731_v15 }
 0x683   :  { %1510 = vmatpush3.bf16.msra.mxu0 %v1626_v39  ;;  %v1371_v39 = vld [vmem:[%s2122_s5 + $0x8] ss:$0 sm:$0xff] }
 0x684   :  { %1511 = vmatprep.subr.bf16.mxu0 %v1731_v15 }
 0x687   :  { %1512 = vmatpush3.bf16.msra.mxu0 %v1627_v40 }
 0x688   :  { %1513 = vmatprep.subr.bf16.mxu0 %v1731_v15 }
 0x68b   :  { %1514 = vmatpush3.bf16.msra.mxu0 %v1628_v41 }
 0x751   :  { %v391_v61 = vpop.f32.mrb[8].mxu0 }
 0x752   :  { %v392_v62 = vadd.f32 %v1357_v16, %v391_v61  ;;  %v1497_v0 = vpop.f32.mrb[9].mxu0 }
 0x753   :  { %v394_v1 = vpop.f32.mrb[10].mxu0 }
 0x754   :  { %v395_v2 = vadd.f32 %v1357_v16, %v394_v1  ;;  %v1498_v3 = vpop.f32.mrb[11].mxu0  ;;  %v398_v4 = vadd.f32 %v392_v62, %v1806_v31 }
 0x756   :  { %v402_v5 = vsel %vm33_vm0, %v398_v4, 0.0  ;;  %v399_v6 = vadd.f32 %v395_v2, %v1808_v32 }
 0x757   :  { %403 = vadd.xlane.f32.xlu0 %v402_v5 }
 0x758   :  { %v405_v7 = vsel %vm33_vm0, %v399_v6, 0.0 }
 0x759   :  { %406 = vadd.xlane.f32.xlu1 %v405_v7 }
 0x7e4   :  { %v404_v8 = vpop.xlane.xlu0 %403 }
 0x7e5   :  { %v408_v9 = vmul.f32 0.03125, %v404_v8 }
 0x7e6   :  { %v407_v10 = vpop.xlane.xlu1 %406 }
 0x7e7   :  { %v410_v11 = vsub.f32 %v398_v4, %v408_v9  ;;  %v409_v12 = vmul.f32 0.03125, %v407_v10 }
 0x7e9   :  { %v411_v13 = vsub.f32 %v399_v6, %v409_v12  ;;  %v412_v17 = vmul.f32 %v410_v11, %v410_v11  ;;  %v1365_v6 = vld [vmem:[%s2122_s5 + $0x7] ss:$0 sm:$0xff] }
 0x7eb   :  { %v414_v18 = vsel %vm33_vm0, %v412_v17, 0.0  ;;  %v413_v19 = vmul.f32 %v411_v13, %v411_v13 }
 0x7ec   :  { %415 = vadd.xlane.f32.xlu0 %v414_v18 }
 0x7ed   :  { %v417_v31 = vsel %vm33_vm0, %v413_v19, 0.0 }
 0x7f0   :  { %418 = vadd.xlane.f32.xlu0 %v417_v31 }
 0x879   :  { %v416_v20 = vpop.xlane.xlu0 %415 }
 0x87a   :  { %v420_v32 = vmul.f32 0.03125, %v416_v20 }
 0x87c   :  { %v422_v21 = vadd.f32 1e-12, %v420_v32 }
 0x87d   :  { %v419_v22 = vpop.xlane.xlu0 %418 }
 0x87e   :  { %1665 = vrsqrt.f32 %v422_v21  ;;  %v421_v23 = vmul.f32 0.03125, %v419_v22 }
 0x880   :  { %v423_v24 = vadd.f32 1e-12, %v421_v23 }
 0x882   :  { %1667 = vrsqrt.f32 %v423_v24 }
 0x888   :  { %v1666_v25 = vpop.eup %1665 }
 0x889   :  { %v426_v26 = vmul.f32 %v1666_v25, %v410_v11 }
 0x88b   :  { %v432_v29 = vmul.f32 %v1359_v27, %v426_v26 }
 0x88c   :  { %v1668_v28 = vpop.eup %1667 }
 0x88d   :  { %v427_v30 = vmul.f32 %v1668_v28, %v411_v13  ;;  %v438_v35 = vadd.f32 %v1360_v33, %v432_v29  ;;  %v1944_v28 = vld [vmem:[%s2119_s2 + $0x20] ss:$8 sps:$4 sm:$0xff]   ;;  %v1950_v29 = vld [vmem:[%s2119_s2 + $0x30] ss:$8 sps:$4 sm:$0xff]  }
 0x88f   :  { %v433_v34 = vmul.f32 %v1359_v27, %v427_v30 }
 0x891   :  { %v439_v36 = vadd.f32 %v1360_v33, %v433_v34 }
 0x893   :  { %v440_v37 = vpack.c.bf16 %v439_v36, %v438_v35 }
 0x895   :  { %1504 = vmatmul.mubr.msk.bf16.vlgmr.msra.gmra.mrb[4].mxu1 %vm33_vm0, %v440_v37 }
 0x896   :  { %1523 = vmatprep.mubr.msk.bf16.mxu1 %vm1732_vm1, %v1731_v15  ;;  %1520 = vmatpush3.bf16.msra.mxu1 %v1944_v28 }
 0x897   :  { %1521 = vmatprep.subr.bf16.mxu1 %v1731_v15 }
 0x89a   :  { %1522 = vmatpush3.bf16.msra.mxu1 %v1950_v29 }
 0x968   :  { %v491_v43 = vpop.f32.mrb[4].mxu1 }
 0x969   :  { %v492_v44 = vadd.f32 %v1361_v42, %v491_v43  ;;  %v1505_v45 = vpop.f32.mrb[5].mxu1 }
 0x96a   :  { %v494_v46 = vpop.f32.mrb[6].mxu1 }
 0x96b   :  { %v500_v47 = vmul.f32 0.044715, %v492_v44  ;;  %v495_v48 = vadd.f32 %v1361_v42, %v494_v46  ;;  %v1506_v49 = vpop.f32.mrb[7].mxu1  ;;  %v498_v0 = vmul.f32 0.5, %v492_v44 }
 0x96c   :  { %v1385_v49 = vld [vmem:[%s2122_s5 + $0xa] ss:$0 sm:$0xff] }
 0x96d   :  { %v502_v50 = vmul.f32 %v500_v47, %v492_v44  ;;  %v501_v51 = vmul.f32 0.044715, %v495_v48  ;;  %v499_v1 = vmul.f32 0.5, %v495_v48 }
 0x96f   :  { %v504_v52 = vmul.f32 %v502_v50, %v492_v44  ;;  %v503_v55 = vmul.f32 %v501_v51, %v495_v48 }
 0x971   :  { %v506_v56 = vadd.f32 %v504_v52, %v492_v44  ;;  %v505_v14 = vmul.f32 %v503_v55, %v495_v48  ;;  %v1372_v44 = vld [vmem:[%s2122_s5 + $0x9] ss:$0 sm:$0xff] }
 0x973   :  { %v508_v57 = vmul.f32 0.7978846, %v506_v56  ;;  %v507_v59 = vadd.f32 %v505_v14, %v495_v48 }
 0x975   :  { %1669 = vtanh.f32 %v508_v57  ;;  %v509_v60 = vmul.f32 0.7978846, %v507_v59 }
 0x977   :  { %1671 = vtanh.f32 %v509_v60 }
 0x97f   :  { %v1670_v16 = vpop.eup %1669 }
 0x980   :  { %v512_v61 = vadd.f32 1.0, %v1670_v16 }
 0x981   :  { %v1672_v62 = vpop.eup %1671 }
 0x982   :  { %v513_v2 = vadd.f32 1.0, %v1672_v62  ;;  %v514_v3 = vmul.f32 %v512_v61, %v498_v0 }
 0x984   :  { %v515_v4 = vmul.f32 %v513_v2, %v499_v1 }
 0x986   :  { %v516_v5 = vpack.c.bf16 %v515_v4, %v514_v3 }
 0x988   :  { %1516 = vmatmul.mubr.msk.bf16.vlgmr.msra.gmra.mrb[12].mxu0 %vm546_vm3, %v516_v5 }
 0xa5b   :  { %v584_v7 = vpop.f32.mrb[12].mxu0 }
 0xa5c   :  { %v585_v8 = vadd.f32 %v1365_v6, %v584_v7  ;;  %v1517_v9 = vpop.f32.mrb[13].mxu0 }
 0xa5d   :  { %v587_v10 = vpop.f32.mrb[14].mxu0 }
 0xa5e   :  { %v588_v11 = vadd.f32 %v1365_v6, %v587_v10  ;;  %v1518_v12 = vpop.f32.mrb[15].mxu0  ;;  %v591_v13 = vadd.f32 %v585_v8, %v438_v35 }
 0xa60   :  { %v595_v17 = vsel %vm33_vm0, %v591_v13, 0.0  ;;  %v592_v18 = vadd.f32 %v588_v11, %v439_v36 }
 0xa61   :  { %596 = vadd.xlane.f32.xlu0 %v595_v17 }
 0xa62   :  { %v598_v19 = vsel %vm33_vm0, %v592_v18, 0.0 }
 0xa63   :  { %599 = vadd.xlane.f32.xlu1 %v598_v19 }
 0xaee   :  { %v597_v31 = vpop.xlane.xlu0 %596 }
 0xaef   :  { %v601_v20 = vmul.f32 0.03125, %v597_v31 }
 0xaf0   :  { %v600_v32 = vpop.xlane.xlu1 %599 }
 0xaf1   :  { %v603_v21 = vsub.f32 %v591_v13, %v601_v20  ;;  %v602_v22 = vmul.f32 0.03125, %v600_v32 }
 0xaf3   :  { %v604_v23 = vsub.f32 %v592_v18, %v602_v22  ;;  %v605_v24 = vmul.f32 %v603_v21, %v603_v21 }
 0xaf5   :  { %v607_v25 = vsel %vm33_vm0, %v605_v24, 0.0  ;;  %v606_v26 = vmul.f32 %v604_v23, %v604_v23 }
 0xaf6   :  { %608 = vadd.xlane.f32.xlu0 %v607_v25 }
 0xaf7   :  { %v610_v27 = vsel %vm33_vm0, %v606_v26, 0.0 }
 0xaf8   :  { %611 = vadd.xlane.f32.xlu1 %v610_v27 }
 0xb83   :  { %v609_v30 = vpop.xlane.xlu0 %608 }
 0xb84   :  { %v613_v33 = vmul.f32 0.03125, %v609_v30 }
 0xb85   :  { %v612_v34 = vpop.xlane.xlu1 %611 }
 0xb86   :  { %v615_v35 = vadd.f32 1e-12, %v613_v33  ;;  %v614_v36 = vmul.f32 0.03125, %v612_v34 }
 0xb88   :  { %1673 = vrsqrt.f32 %v615_v35  ;;  %v616_v37 = vadd.f32 1e-12, %v614_v36 }
 0xb8a   :  { %1675 = vrsqrt.f32 %v616_v37 }
 0xb92   :  { %v1674_v38 = vpop.eup %1673 }
 0xb93   :  { %v619_v40 = vmul.f32 %v1674_v38, %v603_v21 }
 0xb94   :  { %v1676_v41 = vpop.eup %1675 }
 0xb95   :  { %v625_v42 = vmul.f32 %v1371_v39, %v619_v40  ;;  %v620_v43 = vmul.f32 %v1676_v41, %v604_v23 }
 0xb97   :  { %v626_v45 = vmul.f32 %v1371_v39, %v620_v43  ;;  %v1960_v46 = vadd.f32 %v1372_v44, %v625_v42 }
 0xb99   :  { %v1962_v47 = vadd.f32 %v1372_v44, %v626_v45 }
 0xb9b   :  { %v647_v48 = vpack.c.bf16 %v1962_v47, %v1960_v46 }
 0xb9d   :  { %1524 = vmatmul.mubr.msk.bf16.vlgmr.msra.gmra.mrb[8].mxu1 %vm33_vm0, %v647_v48 }
 0xc70   :  { %v702_v50 = vpop.f32.mrb[8].mxu1 }
 0xc71   :  { %v1525_v51 = vpop.f32.mrb[9].mxu1  ;;  %v703_v55 = vadd.f32 %v1385_v49, %v702_v50 }
 0xc72   :  { %v705_v52 = vpop.f32.mrb[10].mxu1 }
 0xc73   :  { %v706_v56 = vadd.f32 %v1385_v49, %v705_v52  ;;  %v1526_v14 = vpop.f32.mrb[11].mxu1 }
 0xc75   :  { %v1609_v57 = vpack.i.bf16 %v706_v56, %v703_v55  ;;  %v1970_v59 = vpack.c.bf16 %v706_v56, %v703_v55 }
 0xc77   :  { %1610 = vrot.lane.b32.xlu0 %v1609_v57, %s1733_s10  ;;  %721 = vrot.lane.b32.xlu1 %v1970_v59, %s1734_s11 }
 0xc78   :  { %1531 = vmatprep.mubr.msk.bf16.mxu1 %vm163_vm2, %v1970_v59 }
 0xce9   :  { %v1611_v60 = vpop.permute.xlu0 %1610  ;;  %v722_v16 = vpop.permute.xlu1 %721 }
 0xcea   :  { %v1613_v61 = vunpack.i.h.bf16 %v1611_v60  ;;  %v1612_v62 = vunpack.i.l.bf16 %v1611_v60  ;;  %v732_v0 = vsel %vm163_vm2, %v722_v16, 0  ;;  %1589 = vmatprep.subr.msk.bf16.mxu1 %vm163_vm2, %v722_v16 }
 0xceb   :  { %1528 = vmatpush3.bf16.xpose.msra.mxu1 %v732_v0 }
 0xcec   :  { %v718_v1 = vpack.c.bf16 %v1613_v61, %v1612_v62 }
 0xcee   :  { %723 = vrot.lane.b32.xlu1 %v718_v1, %s1734_s11 }
 0xd60   :  { %v724_v2 = vpop.permute.xlu1 %723 }
 0xd61   :  { %v735_v3 = vsel %vm163_vm2, %v724_v2, 0  ;;  %1590 = vmatprep.subr.msk.bf16.mxu1 %vm163_vm2, %v724_v2 }
 0xd62   :  { %1530 = vmatpush3.bf16.xpose.msra.mxu1 %v735_v3 }
 0xd63   :  { %1551 = vmatprep.subr.bf16.mxu1 %v1731_v15 }
 0xd69   :  { %1532 = vmatmul.mubr.msk.bf16.vlgmr.msra.gmra.mrb[12].mxu1 %vm163_vm2, %v718_v1 }
 0xd6a   :  { %1555 = vmatprep.mubr.msk.bf16.mxu1 %vm1732_vm1, %v1731_v15 }
 0xe3c   :  { %v1533_v4 = vpop.f32.mrb[12].mxu1 }
 0xe3d   :  { %v780_v5 = vadd.f32 %v1533_v4, %v1847_v53  ;;  %v771_v6 = vpop.f32.mrb[13].mxu1 }
 0xe3e   :  { %v772_v7 = vadd.f32 %v771_v6, %v1852_v54  ;;  %v1534_v8 = vpop.f32.mrb[14].mxu1 }
 0xe3f   :  { %v774_v9 = vpop.f32.mrb[15].mxu1  ;;  %v792_v10 = vsel %vm33_vm0, %v780_v5, -inf  ;;  %v783_v17 = vadd.f32 %v1534_v8, %v1865_v63 }
 0xe40   :  { %v775_v11 = vadd.f32 %v774_v9, %v1858_v58  ;;  %793 = vmax.xlane.f32.xlu0 %v792_v10  ;;  %v786_v12 = vsel %vm33_vm0, %v772_v7, -inf }
 0xe41   :  { %787 = vmax.xlane.f32.xlu1 %v786_v12  ;;  %v795_v53 = vsel %vm33_vm0, %v783_v17, -inf }
 0xe42   :  { %v789_v13 = vsel %vm33_vm0, %v775_v11, -inf }
 0xe44   :  { %790 = vmax.xlane.f32.xlu0 %v789_v13 }
 0xe48   :  { %796 = vmax.xlane.f32.xlu0 %v795_v53 }
 0xecd   :  { %v794_v18 = vpop.xlane.xlu0 %793 }
 0xece   :  { %v800_v54 = vsub.f32 %v780_v5, %v794_v18  ;;  %v788_v19 = vpop.xlane.xlu1 %787 }
 0xecf   :  { %v798_v31 = vsub.f32 %v772_v7, %v788_v19 }
 0xed0   :  { %v806_v20 = vmul.f32 1.442695, %v800_v54 }
 0xed1   :  { %v802_v32 = vmul.f32 1.442695, %v798_v31  ;;  %v791_v21 = vpop.xlane.xlu0 %790 }
 0xed2   :  { %1677 = vpow2.f32 %v806_v20  ;;  %v799_v58 = vsub.f32 %v775_v11, %v791_v21 }
 0xed3   :  { %1679 = vpow2.f32 %v802_v32 }
 0xed4   :  { %v804_v24 = vmul.f32 1.442695, %v799_v58 }
 0xed5   :  { %v797_v22 = vpop.xlane.xlu0 %796 }
 0xed6   :  { %v801_v23 = vsub.f32 %v783_v17, %v797_v22  ;;  %v1634_v22 = vld [vmem:[%s2119_s2 + $0x34] ss:$8 sps:$4 sm:$0xff]  }
 0xed8   :  { %v808_v25 = vmul.f32 1.442695, %v801_v23 }
 0xeda   :  { %1681 = vpow2.f32 %v808_v25 }
 0xedb   :  { %1683 = vpow2.f32 %v804_v24 }
 0xedc   :  { %v1678_v63 = vpop.eup %1677 }
 0xedd   :  { %v816_v26 = vsel %vm33_vm0, %v1678_v63, 0.0  ;;  %v1680_v27 = vpop.eup %1679 }
 0xede   :  { %817 = vadd.xlane.f32.xlu1 %v816_v26  ;;  %v810_v30 = vsel %vm33_vm0, %v1680_v27, 0.0 }
 0xee2   :  { %811 = vadd.xlane.f32.xlu1 %v810_v30 }
 0xee4   :  { %v1682_v33 = vpop.eup %1681 }
 0xee5   :  { %v819_v34 = vsel %vm33_vm0, %v1682_v33, 0.0  ;;  %v1684_v35 = vpop.eup %1683 }
 0xee6   :  { %820 = vadd.xlane.f32.xlu0 %v819_v34  ;;  %v813_v36 = vsel %vm33_vm0, %v1684_v35, 0.0  ;;  %v1395_v34 = vld [vmem:[%s2122_s5 + $0xc] ss:$0 sm:$0xff] }
 0xeea   :  { %814 = vadd.xlane.f32.xlu0 %v813_v36 }
 0xef3   :  { %832 = vrot.lane.b32.xlu1 %v1970_v59, %s1735_s1 }
 0xef7   :  { %909 = vrot.lane.b32.xlu1 %v1944_v28, %s1736_s24 }
 0xf00   :  { %834 = vrot.lane.b32.xlu0 %v718_v1, %s1735_s1 }
 0xf6b   :  { %v818_v37 = vpop.xlane.xlu1 %817 }
 0xf6f   :  { %v812_v38 = vpop.xlane.xlu1 %811 }
 0xf73   :  { %v821_v39 = vpop.xlane.xlu0 %820  ;;  %v833_v40 = vpop.permute.xlu1 %832 }
 0xf74   :  { %1535 = vmatprep.subr.bf16.mxu0 %v833_v40  ;;  %1685 = vrcp.f32 %v821_v39 }
 0xf75   :  { %1536 = vmatpush3.bf16.msra.mxu0 %v833_v40  ;;  %1687 = vrcp.f32 %v812_v38  ;;  %v1396_v38 = vld [vmem:[%s2122_s5 + $0xd] ss:$0 sm:$0xff] }
 0xf76   :  { %1689 = vrcp.f32 %v818_v37 }
 0xf77   :  { %v815_v41 = vpop.xlane.xlu0 %814  ;;  %v910_v56 = vpop.permute.xlu1 %909 }
 0xf78   :  { %1691 = vrcp.f32 %v815_v41 }
 0xf7b   :  { %v835_v42 = vpop.permute.xlu0 %834 }
 0xf7c   :  { %1537 = vmatprep.subr.bf16.mxu0 %v835_v42 }
 0xf7d   :  { %1538 = vmatpush3.bf16.msra.mxu0 %v835_v42 }
 0xf7e   :  { %1543 = vmatprep.subr.bf16.mxu0 %v1731_v15  ;;  %v1686_v43 = vpop.eup %1685 }
 0xf7f   :  { %v1688_v28 = vpop.eup %1687  ;;  %v829_v48 = vmul.f32 %v1686_v43, %v1682_v33  ;;  %v1635_v43 = vld [vmem:[%s2120_s3 + $0x20] sm:$0xff]  }
 0xf80   :  { %v1690_v44 = vpop.eup %1689  ;;  %v826_v49 = vmul.f32 %v1688_v28, %v1680_v27  ;;  %v1636_v28 = vld [vmem:[%s2120_s3 + $0x28] sm:$0xff]  }
 0xf81   :  { %v828_v51 = vmul.f32 %v1690_v44, %v1678_v63  ;;  %v1637_v44 = vld [vmem:[%s2120_s3 + $0x30] sm:$0xff]  }
 0xf82   :  { %v1692_v45 = vpop.eup %1691 }
 0xf83   :  { %v827_v50 = vmul.f32 %v1692_v45, %v1684_v35  ;;  %v831_v55 = vpack.c.bf16 %v829_v48, %v828_v51  ;;  %v1638_v45 = vld [vmem:[%s2120_s3 + $0x38] sm:$0xff]   ;;  %v1397_v48 = vld [vmem:[%s2122_s5 + $0xe] ss:$0 sm:$0xff] }
 0xf85   :  { %v830_v52 = vpack.c.bf16 %v827_v50, %v826_v49 }
 0xf87   :  { %1539 = vmatprep.mubr.msk.bf16.mxu0 %vm33_vm0, %v830_v52 }
 0xf88   :  { %1540 = vmatmul.mubr.msk.bf16.vlgmr.msra.gmra.mrb[16].mxu0 %vm33_vm0, %v831_v55 }
 0xf89   :  { %1547 = vmatprep.mubr.msk.bf16.mxu0 %vm1732_vm1, %v1731_v15  ;;  %1544 = vmatpush3.bf16.msra.mxu0 %v910_v56 }
 0xf8a   :  { %1545 = vmatprep.subr.bf16.mxu0 %v1731_v15 }
0x105b   :  { %v1541_v14 = vpop.f32.mrb[16].mxu0 }
0x105c   :  { %v878_v57 = vpop.f32.mrb[17].mxu0 }
0x105d   :  { %v1542_v59 = vpop.f32.mrb[18].mxu0 }
0x105e   :  { %v1614_v60 = vpack.i.bf16 %v1542_v59, %v1541_v14  ;;  %v881_v16 = vpop.f32.mrb[19].mxu0 }
0x1060   :  { %1615 = vrot.lane.b32.xlu1 %v1614_v60, %s1737_s0 }
0x1064   :  { %911 = vrot.lane.b32.xlu1 %v1950_v29, %s1736_s24  ;;  %v1393_v29 = vld [vmem:[%s2122_s5 + $0xb] ss:$0 sm:$0xff] }
0x10d2   :  { %v1616_v61 = vpop.permute.xlu1 %1615 }
0x10d3   :  { %v1618_v62 = vunpack.i.h.bf16 %v1616_v61  ;;  %v1617_v0 = vunpack.i.l.bf16 %v1616_v61 }
0x10d5   :  { %v901_v1 = vsel %vm163_vm2, %v878_v57, %v1617_v0  ;;  %v902_v2 = vsel %vm163_vm2, %v881_v16, %v1618_v62 }
0x10d6   :  { %v903_v3 = vpack.c.bf16 %v902_v2, %v901_v1  ;;  %v912_v4 = vpop.permute.xlu1 %911 }
0x10d7   :  { %1546 = vmatpush3.bf16.msra.mxu0 %v912_v4 }
0x10d8   :  { %1559 = vmatprep.subr.bf16.mxu0 %v1731_v15 }
0x10da   :  { %1548 = vmatmul.mubr.msk.bf16.vlgmr.msra.gmra.mrb[20].mxu0 %vm33_vm0, %v903_v3 }
0x10db   :  { %1567 = vmatprep.mubr.msk.bf16.mxu0 %vm1732_vm1, %v1731_v15  ;;  %1560 = vmatpush3.bf16.msra.mxu0 %v1635_v43 }
0x10dc   :  { %1561 = vmatprep.subr.bf16.mxu0 %v1731_v15 }
0x10df   :  { %1562 = vmatpush3.bf16.msra.mxu0 %v1636_v28  ;;  %v1407_v28 = vld [vmem:[%s2122_s5 + $0x10] ss:$0 sm:$0xff] }
0x10e0   :  { %1563 = vmatprep.subr.bf16.mxu0 %v1731_v15 }
0x10e3   :  { %1564 = vmatpush3.bf16.msra.mxu0 %v1637_v44 }
0x10e4   :  { %1565 = vmatprep.subr.bf16.mxu0 %v1731_v15 }
0x10e7   :  { %1566 = vmatpush3.bf16.msra.mxu0 %v1638_v45 }
0x11ad   :  { %v952_v5 = vpop.f32.mrb[20].mxu0 }
0x11ae   :  { %v953_v6 = vadd.f32 %v1393_v29, %v952_v5  ;;  %v1549_v7 = vpop.f32.mrb[21].mxu0 }
0x11af   :  { %v955_v8 = vpop.f32.mrb[22].mxu0 }
0x11b0   :  { %v956_v9 = vadd.f32 %v1393_v29, %v955_v8  ;;  %v1550_v10 = vpop.f32.mrb[23].mxu0  ;;  %v959_v11 = vadd.f32 %v953_v6, %v1960_v46 }
0x11b2   :  { %v963_v12 = vsel %vm33_vm0, %v959_v11, 0.0  ;;  %v960_v13 = vadd.f32 %v956_v9, %v1962_v47  ;;  %v1633_v47 = vld [vmem:[%s2119_s2 + $0x24] ss:$8 sps:$4 sm:$0xff]  }
0x11b3   :  { %964 = vadd.xlane.f32.xlu0 %v963_v12  ;;  %1552 = vmatpush3.bf16.msra.mxu1 %v1633_v47 }
0x11b4   :  { %v966_v17 = vsel %vm33_vm0, %v960_v13, 0.0  ;;  %1553 = vmatprep.subr.bf16.mxu1 %v1731_v15 }
0x11b5   :  { %967 = vadd.xlane.f32.xlu1 %v966_v17 }
0x11b7   :  { %1554 = vmatpush3.bf16.msra.mxu1 %v1634_v22 }
0x11b8   :  { %1571 = vmatprep.subr.bf16.mxu1 %v1731_v15 }
0x1240   :  { %v965_v53 = vpop.xlane.xlu0 %964 }
0x1241   :  { %v969_v18 = vmul.f32 0.03125, %v965_v53 }
0x1242   :  { %v968_v54 = vpop.xlane.xlu1 %967 }
0x1243   :  { %v971_v19 = vsub.f32 %v959_v11, %v969_v18  ;;  %v970_v31 = vmul.f32 0.03125, %v968_v54  ;;  %v1401_v11 = vld [vmem:[%s2122_s5 + $0xf] ss:$0 sm:$0xff] }
0x1245   :  { %v972_v20 = vsub.f32 %v960_v13, %v970_v31  ;;  %v973_v32 = vmul.f32 %v971_v19, %v971_v19 }
0x1247   :  { %v975_v21 = vsel %vm33_vm0, %v973_v32, 0.0  ;;  %v974_v58 = vmul.f32 %v972_v20, %v972_v20 }
0x1248   :  { %976 = vadd.xlane.f32.xlu0 %v975_v21 }
0x1249   :  { %v978_v46 = vsel %vm33_vm0, %v974_v58, 0.0 }
0x124c   :  { %979 = vadd.xlane.f32.xlu0 %v978_v46 }
0x12d5   :  { %v977_v23 = vpop.xlane.xlu0 %976 }
0x12d6   :  { %v981_v24 = vmul.f32 0.03125, %v977_v23 }
0x12d8   :  { %v983_v25 = vadd.f32 1e-12, %v981_v24 }
0x12d9   :  { %v980_v63 = vpop.xlane.xlu0 %979 }
0x12da   :  { %1693 = vrsqrt.f32 %v983_v25  ;;  %v982_v26 = vmul.f32 0.03125, %v980_v63 }
0x12dc   :  { %v984_v27 = vadd.f32 1e-12, %v982_v26 }
0x12de   :  { %1695 = vrsqrt.f32 %v984_v27  ;;  %v1639_v27 = vld [vmem:[%s2121_s4] ss:$8 sps:$4 sm:$0xff]  }
0x12e4   :  { %v1694_v30 = vpop.eup %1693 }
0x12e5   :  { %v987_v33 = vmul.f32 %v1694_v30, %v971_v19  ;;  %v1641_v30 = vld [vmem:[%s2121_s4 + $0x10] ss:$8 sps:$4 sm:$0xff]  }
0x12e7   :  { %v993_v36 = vmul.f32 %v1395_v34, %v987_v33  ;;  %v1643_v33 = vld [vmem:[%s2121_s4 + $0x4] ss:$8 sps:$4 sm:$0xff]  }
0x12e8   :  { %v1696_v35 = vpop.eup %1695 }
0x12e9   :  { %v988_v37 = vmul.f32 %v1696_v35, %v972_v20  ;;  %v999_v40 = vadd.f32 %v1396_v38, %v993_v36 }
0x12eb   :  { %v994_v39 = vmul.f32 %v1395_v34, %v988_v37  ;;  %v1644_v34 = vld [vmem:[%s2121_s4 + $0x14] ss:$8 sps:$4 sm:$0xff]  }
0x12ed   :  { %v1000_v41 = vadd.f32 %v1396_v38, %v994_v39 }
0x12ef   :  { %v1001_v42 = vpack.c.bf16 %v1000_v41, %v999_v40 }
0x12f1   :  { %1556 = vmatmul.mubr.msk.bf16.vlgmr.msra.gmra.mrb[16].mxu1 %vm33_vm0, %v1001_v42 }
0x12f2   :  { %1575 = vmatprep.mubr.msk.bf16.mxu1 %vm1732_vm1, %v1731_v15  ;;  %1572 = vmatpush3.bf16.msra.mxu1 %v1639_v27 }
0x12f3   :  { %1573 = vmatprep.subr.bf16.mxu1 %v1731_v15 }
0x12f6   :  { %1574 = vmatpush3.bf16.msra.mxu1 %v1641_v30 }
0x12f7   :  { %1579 = vmatprep.subr.bf16.mxu1 %v1731_v15 }
0x13c4   :  { %v1052_v49 = vpop.f32.mrb[16].mxu1 }
0x13c5   :  { %v1053_v50 = vadd.f32 %v1397_v48, %v1052_v49  ;;  %v1557_v51 = vpop.f32.mrb[17].mxu1  ;;  %v1408_v49 = vld [vmem:[%s2122_s5 + $0x11] ss:$0 sm:$0xff] }
0x13c6   :  { %v1055_v52 = vpop.f32.mrb[18].mxu1 }
0x13c7   :  { %v1061_v55 = vmul.f32 0.044715, %v1053_v50  ;;  %v1056_v56 = vadd.f32 %v1397_v48, %v1055_v52  ;;  %v1558_v14 = vpop.f32.mrb[19].mxu1  ;;  %v1059_v5 = vmul.f32 0.5, %v1053_v50 }
0x13c9   :  { %v1063_v57 = vmul.f32 %v1061_v55, %v1053_v50  ;;  %v1062_v59 = vmul.f32 0.044715, %v1056_v56  ;;  %v1060_v6 = vmul.f32 0.5, %v1056_v56 }
0x13cb   :  { %v1065_v60 = vmul.f32 %v1063_v57, %v1053_v50  ;;  %v1064_v16 = vmul.f32 %v1062_v59, %v1056_v56 }
0x13cd   :  { %v1067_v61 = vadd.f32 %v1065_v60, %v1053_v50  ;;  %v1066_v62 = vmul.f32 %v1064_v16, %v1056_v56 }
0x13cf   :  { %v1069_v0 = vmul.f32 0.7978846, %v1067_v61  ;;  %v1068_v1 = vadd.f32 %v1066_v62, %v1056_v56  ;;  %v1409_v62 = vld [vmem:[%s2122_s5 + $0x12] ss:$0 sm:$0xff] }
0x13d1   :  { %1697 = vtanh.f32 %v1069_v0  ;;  %v1070_v2 = vmul.f32 0.7978846, %v1068_v1 }
0x13d3   :  { %1699 = vtanh.f32 %v1070_v2 }
0x13db   :  { %v1698_v3 = vpop.eup %1697 }
0x13dc   :  { %v1073_v4 = vadd.f32 1.0, %v1698_v3 }
0x13dd   :  { %v1700_v29 = vpop.eup %1699 }
0x13de   :  { %v1074_v7 = vadd.f32 1.0, %v1700_v29  ;;  %v1075_v8 = vmul.f32 %v1073_v4, %v1059_v5 }
0x13e0   :  { %v1076_v9 = vmul.f32 %v1074_v7, %v1060_v6 }
0x13e2   :  { %v1077_v10 = vpack.c.bf16 %v1076_v9, %v1075_v8 }
0x13e4   :  { %1568 = vmatmul.mubr.msk.bf16.vlgmr.msra.gmra.mrb[24].mxu0 %vm546_vm3, %v1077_v10 }
0x14b7   :  { %v1144_v12 = vpop.f32.mrb[24].mxu0 }
0x14b8   :  { %v1145_v13 = vadd.f32 %v1401_v11, %v1144_v12  ;;  %v1569_v17 = vpop.f32.mrb[25].mxu0 }
0x14b9   :  { %v1147_v53 = vpop.f32.mrb[26].mxu0 }
0x14ba   :  { %v1148_v18 = vadd.f32 %v1401_v11, %v1147_v53  ;;  %v1570_v54 = vpop.f32.mrb[27].mxu0  ;;  %v1151_v19 = vadd.f32 %v1145_v13, %v999_v40 }
0x14bc   :  { %v1155_v31 = vsel %vm33_vm0, %v1151_v19, 0.0  ;;  %v1152_v20 = vadd.f32 %v1148_v18, %v1000_v41 }
0x14bd   :  { %1156 = vadd.xlane.f32.xlu1 %v1155_v31 }
0x14be   :  { %v1158_v32 = vsel %vm33_vm0, %v1152_v20, 0.0 }
0x14bf   :  { %1159 = vadd.xlane.f32.xlu0 %v1158_v32 }
0x154a   :  { %v1157_v21 = vpop.xlane.xlu1 %1156 }
0x154b   :  { %v1161_v58 = vmul.f32 0.03125, %v1157_v21 }
0x154c   :  { %v1160_v46 = vpop.xlane.xlu0 %1159 }
0x154d   :  { %v1163_v47 = vsub.f32 %v1151_v19, %v1161_v58  ;;  %v1162_v22 = vmul.f32 0.03125, %v1160_v46 }
0x154f   :  { %v1164_v23 = vsub.f32 %v1152_v20, %v1162_v22  ;;  %v1165_v24 = vmul.f32 %v1163_v47, %v1163_v47 }
0x1551   :  { %v1167_v25 = vsel %vm33_vm0, %v1165_v24, 0.0  ;;  %v1166_v63 = vmul.f32 %v1164_v23, %v1164_v23 }
0x1552   :  { %1168 = vadd.xlane.f32.xlu1 %v1167_v25 }
0x1553   :  { %v1170_v26 = vsel %vm33_vm0, %v1166_v63, 0.0 }
0x1554   :  { %1171 = vadd.xlane.f32.xlu0 %v1170_v26 }
0x1563   :  { %1278 = vrot.lane.b32.xlu1 %v1643_v33, %s1734_s11 }
0x1567   :  { %1280 = vrot.lane.b32.xlu1 %v1641_v30, %s1734_s11 }
0x156a   :  { %1276 = vrot.lane.b32.xlu0 %v1639_v27, %s1734_s11 }
0x156b   :  { %1282 = vrot.lane.b32.xlu1 %v1644_v34, %s1734_s11 }
0x15df   :  { %v1169_v35 = vpop.xlane.xlu1 %1168 }
0x15e0   :  { %v1173_v36 = vmul.f32 0.03125, %v1169_v35 }
0x15e1   :  { %v1172_v37 = vpop.xlane.xlu0 %1171 }
0x15e2   :  { %v1175_v38 = vadd.f32 1e-12, %v1173_v36  ;;  %v1174_v39 = vmul.f32 0.03125, %v1172_v37 }
0x15e3   :  { %v1279_v14 = vpop.permute.xlu1 %1278 }
0x15e4   :  { %1701 = vrsqrt.f32 %v1175_v38  ;;  %v1176_v40 = vadd.f32 1e-12, %v1174_v39 }
0x15e5   :  { %v1277_v59 = vpop.permute.xlu0 %1276 }
0x15e6   :  { %1703 = vrsqrt.f32 %v1176_v40  ;;  %v1285_v60 = vsel %vm1284_vm5, %v1277_v59, %v1279_v14 }
0x15e7   :  { %v1281_v57 = vpop.permute.xlu1 %1280 }
0x15eb   :  { %v1283_v16 = vpop.permute.xlu1 %1282 }
0x15ec   :  { %v1286_v61 = vsel %vm1284_vm5, %v1281_v57, %v1283_v16 }
0x15ee   :  { %v1702_v41 = vpop.eup %1701 }
0x15ef   :  { %v1179_v42 = vmul.f32 %v1702_v41, %v1163_v47 }
0x15f0   :  { %v1704_v43 = vpop.eup %1703 }
0x15f1   :  { %v1180_v44 = vmul.f32 %v1704_v43, %v1164_v23  ;;  %v1185_v45 = vmul.f32 %v1407_v28, %v1179_v42 }
0x15f3   :  { %v1186_v48 = vmul.f32 %v1407_v28, %v1180_v44  ;;  %v1191_v51 = vadd.f32 %v1408_v49, %v1185_v45 }
0x15f5   :  { %v1192_v50 = vadd.f32 %v1408_v49, %v1186_v48 }
0x15f7   :  { %v1194_v52 = vrot.slane %v1192_v50, 7 }
0x15f9   :  { %v1197_v55 = vsel %vm1196_vm4, %v1191_v51, %v1194_v52 }
0x15fa   :  { %v1202_v56 = vpack.c.bf16 %v1197_v55, %v1197_v55 }
0x15fc   :  { %1576 = vmatmul.mubr.msk.bf16.vlgmr.msra.gmra.mrb[20].mxu1 %vm33_vm0, %v1202_v56 }
0x15fd   :  { %1583 = vmatprep.mubr.msk.bf16.mxu1 %vm1732_vm1, %v1731_v15  ;;  %1580 = vmatpush3.bf16.msra.mxu1 %v1285_v60 }
0x15fe   :  { %1581 = vmatprep.subr.bf16.mxu1 %v1731_v15  ;;  %v1413_v15 = vld [vmem:[%s2122_s5 + $0x13] ss:$0 sm:$0xff] }
0x1601   :  { %1582 = vmatpush3.bf16.msra.mxu1 %v1286_v61 }
0x16cf   :  { %v1257_v0 = vpop.f32.mrb[20].mxu1 }
0x16d0   :  { %v1258_v1 = vadd.f32 %v1409_v62, %v1257_v0  ;;  %v1577_v2 = vpop.f32.mrb[21].mxu1 }
0x16d1   :  { %v1260_v3 = vpop.f32.mrb[22].mxu1 }
0x16d2   :  { %1705 = vtanh.f32 %v1258_v1  ;;  %v1578_v4 = vpop.f32.mrb[23].mxu1 }
0x16dc   :  { %v1706_v29 = vpop.eup %1705 }
0x16dd   :  { %v1264_v5 = vpack.c.bf16 %v1706_v29, %v1706_v29 }
0x16df   :  { %1584 = vmatmul.mubr.msk.bf16.vlgmr.msra.gmra.mrb[24].mxu1 %vm33_vm0, %v1264_v5 }
0x17b2   :  { %v1326_v6 = vpop.f32.mrb[24].mxu1 }
0x17b3   :  { %v1327_v7 = vadd.f32 %v1413_v15, %v1326_v6  ;;  %v1585_v8 = vpop.f32.mrb[25].mxu1 }
0x17b4   :  { %v1329_v9 = vpop.f32.mrb[26].mxu1 }
0x17b5   :  { %1332 = vst [vmem:[#allocation2] sm:$0x3] %v1327_v7  ;;  %v1586_v10 = vpop.f32.mrb[27].mxu1 }
0x17b6   :  { %1718 = shalt.err (!%p1715_p4)
}
0x17b7   :  { %s1719_s5 = scalar_lea.hbm %s2123_s6, 32 }
0x17b8   :  { %p1720_p5 = scmp.ne.s32.totalorder %s2123_s6, %s1719_s5  ;;  %p1723_p6 = scmp.lt.u32.totalorder %s1719_s5, %s2123_s6 }
0x17ba   :  { %p1725_p7 = pnand %p1723_p6, %p1720_p5 }
0x17bc   :  { %1728 = shalt.err (!%p1725_p7)
}
0x17bd   :  { %1342 = dma.vmem_to_hbm [thread:$0]  %s1340_s15, 32, %s2123_s6, [#allocation3]  }
0x17be   :  { %1729 = dma.done.wait [#allocation3], 32  }
0x17bf   :  { %1730 = vsyncadd [#allocation3], 4294967264 }
0x17c0   :  { %1346 = vsyncpa [#allocation3], 1 }

</bundles_post_ra>
